<compile_context>
chip_gen: v7x
topology: tpu7x:2x2x1
jax: 0.10.0
libtpu: 0.0.40
codegen_flags: <defaults>
</compile_context>

<pallas_src>
import jax
import jax.numpy as jnp
from jax import lax
from jax.experimental import pallas as pl
from jax.experimental.pallas import tpu as pltpu

K = 3              # conbr_block kernel_size = kernel_size - 2 = 5 - 2
PAD = 2            # conbr_block padding
CONV_KERNELS = 64  # default conv_kernels
HIDDEN = 128       # default LSTM_units


def _sigmoid(z):
    # explicit exp-based sigmoid (EUP) to keep lowering simple
    return 1.0 / (1.0 + jnp.exp(-z))


def _deepconvlstm2_kernel(
    x_ref,
    w1_ref, s1_ref, b1_ref,
    w2_ref, s2_ref, b2_ref,
    w3_ref, s3_ref, b3_ref,
    w4_ref, s4_ref, b4_ref,
    wih1_ref, whh1_ref, bl1_ref,
    wih2_ref, whh2_ref, bl2_ref,
    o_ref,
    p1_ref, p2_ref, p3_ref, p4_ref, seq_ref,
):
    H = HIDDEN

    def conv_bn_relu_bcast(pad_ref, y, w_ref, s_ref, b_ref):
        # Cin == 1: conv as K broadcasted multiply-adds on the VPU.
        lin = y.shape[0]
        lo = lin + 2 * PAD - K + 1          # = lin + 2
        pad_ref[...] = jnp.zeros_like(pad_ref)
        pad_ref[PAD:PAD + lin, :] = y
        acc = pad_ref[0:lo, :] * w_ref[0]                       # (lo,1)*(1,Cout)
        for t in range(1, K):
            acc = acc + pad_ref[t:t + lo, :] * w_ref[t]
        return jnp.maximum(acc * s_ref[...] + b_ref[...], 0.0)  # BN(eval)+ReLU

    def conv_bn_relu_mxu(pad_ref, y, w_ref, s_ref, b_ref):
        # Conv1d(pad=2,k=3) as K shifted bf16 matmuls on the MXU, f32 accumulate.
        lin = y.shape[0]
        lo = lin + 2 * PAD - K + 1
        pad_ref[...] = jnp.zeros_like(pad_ref)
        pad_ref[PAD:PAD + lin, :] = y
        acc = jnp.dot(pad_ref[0:lo, :].astype(jnp.bfloat16), w_ref[0],
                      preferred_element_type=jnp.float32)
        for t in range(1, K):
            acc = acc + jnp.dot(pad_ref[t:t + lo, :].astype(jnp.bfloat16),
                                w_ref[t], preferred_element_type=jnp.float32)
        return jnp.maximum(acc * s_ref[...] + b_ref[...], 0.0)  # BN(eval)+ReLU

    # ---- conv backbone (conv1_2 .. conv4_2); activations never leave VMEM ----
    x = x_ref[0]                                                # (L, 1) f32
    y = conv_bn_relu_bcast(p1_ref, x, w1_ref, s1_ref, b1_ref)   # (L+2, 64)
    y = conv_bn_relu_mxu(p2_ref, y, w2_ref, s2_ref, b2_ref)     # (L+4, 128)
    y = conv_bn_relu_mxu(p3_ref, y, w3_ref, s3_ref, b3_ref)     # (L+6, 128)
    y = conv_bn_relu_mxu(p4_ref, y, w4_ref, s4_ref, b4_ref)     # (L+8, 128)

    # unsqueeze/permute/reshape -> time-major LSTM input; Dropout(0.5) is
    # identity in inference mode.
    seq_ref[...] = y                                            # (T, 128) f32

    def lstm_cell(x_t, h, c, wih_ref, whh_ref, b_ref):
        gates = (jnp.dot(x_t.astype(jnp.bfloat16), wih_ref[...],
                         preferred_element_type=jnp.float32)
                 + jnp.dot(h.astype(jnp.bfloat16), whh_ref[...],
                           preferred_element_type=jnp.float32)
                 + b_ref[...])                                  # (1, 4H) f32
        i = _sigmoid(gates[:, 0 * H:1 * H])
        f = _sigmoid(gates[:, 1 * H:2 * H])
        g = jnp.tanh(gates[:, 2 * H:3 * H])
        o = _sigmoid(gates[:, 3 * H:4 * H])
        c_new = f * c + i * g
        h_new = o * jnp.tanh(c_new)
        return h_new, c_new

    T = seq_ref.shape[0]
    z = jnp.zeros((1, H), jnp.float32)

    def step(t, carry):
        h1, c1, h2, c2 = carry
        x_t = seq_ref[pl.ds(t, 1), :]                           # (1, 128)
        h1, c1 = lstm_cell(x_t, h1, c1, wih1_ref, whh1_ref, bl1_ref)
        h2, c2 = lstm_cell(h1, h2, c2, wih2_ref, whh2_ref, bl2_ref)
        return (h1, c1, h2, c2)

    _, _, h2, _ = lax.fori_loop(0, T, step, (z, z, z, z))
    o_ref[0] = h2                                               # LSTM out[-1, :, :]


def _const_spec(shape):
    # Whole-array block, same block for every grid step (weights stay resident).
    if len(shape) == 2:
        return pl.BlockSpec(shape, lambda b: (0, 0))
    return pl.BlockSpec(shape, lambda b: (0, 0, 0))


def deepconvlstm2_forward(x, params, backbone=True):
    # x: (B, L, n_channels=1) — PyTorch permutes to NCW; kernel is channels-last.
    convs, lstm = params
    B, L, C = x.shape
    assert C == 1, "conv1_2 has in_channels=1, so n_channels must be 1"
    (w1, s1, b1), (w2, s2, b2), (w3, s3, b3), (w4, s4, b4) = convs
    (wih1, whh1, bl1), (wih2, whh2, bl2) = lstm
    H = whh1.shape[0]
    grow = 2 * PAD - K + 1            # +2 per conv layer
    T = L + 4 * grow                  # LSTM sequence length
    c1o = w1.shape[2]                 # 64
    c2o = w2.shape[2]                 # 128

    weights = (w1, s1, b1, w2, s2, b2, w3, s3, b3, w4, s4, b4,
               wih1, whh1, bl1, wih2, whh2, bl2)

    out = pl.pallas_call(
        _deepconvlstm2_kernel,
        out_shape=jax.ShapeDtypeStruct((B, 1, H), jnp.float32),
        grid=(B,),
        in_specs=[pl.BlockSpec((1, L, 1), lambda b: (b, 0, 0))]
                 + [_const_spec(w.shape) for w in weights],
        out_specs=pl.BlockSpec((1, 1, H), lambda b: (b, 0, 0)),
        scratch_shapes=[
            pltpu.VMEM((L + 2 * PAD, 1), jnp.float32),               # pad buf conv1_2
            pltpu.VMEM((L + 1 * grow + 2 * PAD, c1o), jnp.float32),  # pad buf conv2_2
            pltpu.VMEM((L + 2 * grow + 2 * PAD, c2o), jnp.float32),  # pad buf conv3_2
            pltpu.VMEM((L + 3 * grow + 2 * PAD, c2o), jnp.float32),  # pad buf conv4_2
            pltpu.VMEM((T, c2o), jnp.float32),                       # LSTM input seq
        ],
        compiler_params=pltpu.CompilerParams(
            dimension_semantics=("parallel",),   # batch axis -> both TCs on v7x
        ),
    )(x, *weights)

    feats = out[:, 0, :]                         # (B, LSTM_units)
    if backbone:
        return None, feats
    # TODO(synk): backbone=False Linear classifier head not implemented
    #             (module default is backbone=True, returning (None, feats)).
    return None, feats


def init_params(key, conv_kernels=CONV_KERNELS, lstm_units=HIDDEN, n_channels=1):
    eps = 1e-5
    conv_specs = [
        (K, 1, conv_kernels),                      # conv1_2
        (K, conv_kernels, 2 * conv_kernels),       # conv2_2
        (K, 2 * conv_kernels, 2 * conv_kernels),   # conv3_2
        (K, 2 * conv_kernels, 2 * conv_kernels),   # conv4_2
    ]
    convs = []
    for i, (kk, ci, co) in enumerate(conv_specs):
        kw, kb, kg, kbt = jax.random.split(jax.random.fold_in(key, i), 4)
        w = jax.random.normal(kw, (kk, ci, co), jnp.float32) / jnp.sqrt(float(kk * ci))
        conv_bias = 0.05 * jax.random.normal(kb, (1, co), jnp.float32)
        gamma = 1.0 + 0.1 * jax.random.normal(kg, (1, co), jnp.float32)
        beta = 0.1 * jax.random.normal(kbt, (1, co), jnp.float32)
        # BatchNorm1d eval mode with fresh-init running stats (mean=0, var=1);
        # Conv1d bias folded through BN into the additive term.
        scale = gamma / jnp.sqrt(1.0 + eps)
        bias = scale * conv_bias + beta
        w = w if i == 0 else w.astype(jnp.bfloat16)   # layer 1 (Cin=1) stays f32 (VPU path)
        convs.append((w, scale, bias))

    # 2-layer LSTM, hidden=lstm_units; layer-0 input = n_channels*2*conv_kernels.
    d_in = [n_channels * 2 * conv_kernels, lstm_units]
    lstm = []
    for l in range(2):
        kih, khh, kb1, kb2 = jax.random.split(jax.random.fold_in(key, 100 + l), 4)
        bound = 1.0 / float(lstm_units) ** 0.5
        wih = jax.random.uniform(kih, (d_in[l], 4 * lstm_units), jnp.float32, -bound, bound)
        whh = jax.random.uniform(khh, (lstm_units, 4 * lstm_units), jnp.float32, -bound, bound)
        b = (jax.random.uniform(kb1, (1, 4 * lstm_units), jnp.float32, -bound, bound)
             + jax.random.uniform(kb2, (1, 4 * lstm_units), jnp.float32, -bound, bound))
        lstm.append((wih.astype(jnp.bfloat16), whh.astype(jnp.bfloat16), b))
    return convs, lstm


if __name__ == "__main__":
    key = jax.random.PRNGKey(0)
    kx, kp = jax.random.split(key)
    B, L, n_channels = 2, 16, 1   # n_channels=1 required by conv1_2(in_channels=1)
    x = jax.random.normal(kx, (B, L, n_channels), jnp.float32)
    params = init_params(kp, n_channels=n_channels)

    logits, feats = jax.jit(
        lambda xx: deepconvlstm2_forward(xx, params, backbone=True))(x)
    feats = jax.block_until_ready(feats)

    assert logits is None
    assert feats.shape == (B, HIDDEN), feats.shape
    assert bool(jnp.all(jnp.isfinite(feats)))
    print("KERNEL_OK")
</pallas_src>

<mosaic_0001>
module attributes {stable_mosaic.version = 11 : i64} {
  func.func @_deepconvlstm2_kernel(%arg0: i32, %arg1: memref<1x16x1xf32, #tpu.memory_space<vmem>>, %arg2: memref<3x1x64xf32, #tpu.memory_space<vmem>>, %arg3: memref<1x64xf32, #tpu.memory_space<vmem>>, %arg4: memref<1x64xf32, #tpu.memory_space<vmem>>, %arg5: memref<3x64x128xbf16, #tpu.memory_space<vmem>>, %arg6: memref<1x128xf32, #tpu.memory_space<vmem>>, %arg7: memref<1x128xf32, #tpu.memory_space<vmem>>, %arg8: memref<3x128x128xbf16, #tpu.memory_space<vmem>>, %arg9: memref<1x128xf32, #tpu.memory_space<vmem>>, %arg10: memref<1x128xf32, #tpu.memory_space<vmem>>, %arg11: memref<3x128x128xbf16, #tpu.memory_space<vmem>>, %arg12: memref<1x128xf32, #tpu.memory_space<vmem>>, %arg13: memref<1x128xf32, #tpu.memory_space<vmem>>, %arg14: memref<128x512xbf16, #tpu.memory_space<vmem>>, %arg15: memref<128x512xbf16, #tpu.memory_space<vmem>>, %arg16: memref<1x512xf32, #tpu.memory_space<vmem>>, %arg17: memref<128x512xbf16, #tpu.memory_space<vmem>>, %arg18: memref<128x512xbf16, #tpu.memory_space<vmem>>, %arg19: memref<1x512xf32, #tpu.memory_space<vmem>>, %arg20: memref<1x1x128xf32, #tpu.memory_space<vmem>>, %arg21: memref<20x1xf32, #tpu.memory_space<vmem>>, %arg22: memref<22x64xf32, #tpu.memory_space<vmem>>, %arg23: memref<24x128xf32, #tpu.memory_space<vmem>>, %arg24: memref<26x128xf32, #tpu.memory_space<vmem>>, %arg25: memref<24x128xf32, #tpu.memory_space<vmem>>) attributes {dimension_semantics = [#tpu.dimension_semantics<parallel>], iteration_bounds = array<i64: 2>, scalar_prefetch = 0 : i64, scratch_operands = 5 : i64, tpu.core_type = #tpu.core_type<tc>, window_params = [{transform_indices = @transform_0, window_bounds = array<i64: 1, 16, 1>}, {pipeline_mode = #tpu.pipeline_mode<synchronous>, transform_indices = @transform_1, window_bounds = array<i64: 3, 1, 64>}, {pipeline_mode = #tpu.pipeline_mode<synchronous>, transform_indices = @transform_2, window_bounds = array<i64: 1, 64>}, {pipeline_mode = #tpu.pipeline_mode<synchronous>, transform_indices = @transform_3, window_bounds = array<i64: 1, 64>}, {pipeline_mode = #tpu.pipeline_mode<synchronous>, transform_indices = @transform_4, window_bounds = array<i64: 3, 64, 128>}, {pipeline_mode = #tpu.pipeline_mode<synchronous>, transform_indices = @transform_5, window_bounds = array<i64: 1, 128>}, {pipeline_mode = #tpu.pipeline_mode<synchronous>, transform_indices = @transform_6, window_bounds = array<i64: 1, 128>}, {pipeline_mode = #tpu.pipeline_mode<synchronous>, transform_indices = @transform_7, window_bounds = array<i64: 3, 128, 128>}, {pipeline_mode = #tpu.pipeline_mode<synchronous>, transform_indices = @transform_8, window_bounds = array<i64: 1, 128>}, {pipeline_mode = #tpu.pipeline_mode<synchronous>, transform_indices = @transform_9, window_bounds = array<i64: 1, 128>}, {pipeline_mode = #tpu.pipeline_mode<synchronous>, transform_indices = @transform_10, window_bounds = array<i64: 3, 128, 128>}, {pipeline_mode = #tpu.pipeline_mode<synchronous>, transform_indices = @transform_11, window_bounds = array<i64: 1, 128>}, {pipeline_mode = #tpu.pipeline_mode<synchronous>, transform_indices = @transform_12, window_bounds = array<i64: 1, 128>}, {pipeline_mode = #tpu.pipeline_mode<synchronous>, transform_indices = @transform_13, window_bounds = array<i64: 128, 512>}, {pipeline_mode = #tpu.pipeline_mode<synchronous>, transform_indices = @transform_14, window_bounds = array<i64: 128, 512>}, {pipeline_mode = #tpu.pipeline_mode<synchronous>, transform_indices = @transform_15, window_bounds = array<i64: 1, 512>}, {pipeline_mode = #tpu.pipeline_mode<synchronous>, transform_indices = @transform_16, window_bounds = array<i64: 128, 512>}, {pipeline_mode = #tpu.pipeline_mode<synchronous>, transform_indices = @transform_17, window_bounds = array<i64: 128, 512>}, {pipeline_mode = #tpu.pipeline_mode<synchronous>, transform_indices = @transform_18, window_bounds = array<i64: 1, 512>}, {transform_indices = @transform_19, window_bounds = array<i64: 1, 1, 128>}]} {
    %c0 = arith.constant 0 : index
    %c0_0 = arith.constant 0 : index
    %c0_1 = arith.constant 0 : index
    %0 = vector.load %arg1[%c0, %c0_0, %c0_1] : memref<1x16x1xf32, #tpu.memory_space<vmem>>, vector<1x16x1xf32>
    %1 = vector.shape_cast %0 : vector<1x16x1xf32> to vector<16x1xf32>
    %cst = arith.constant 0.000000e+00 : f32
    %2 = vector.broadcast %cst : f32 to vector<20x1xf32>
    %c0_2 = arith.constant 0 : index
    %c0_3 = arith.constant 0 : index
    %3 = vector.load %arg21[%c0_2, %c0_3] : memref<20x1xf32, #tpu.memory_space<vmem>>, vector<20x1xf32>
    tpu.vector_store %arg21[%c0_2, %c0_3], %2 {strides = array<i32>} : memref<20x1xf32, #tpu.memory_space<vmem>>, vector<20x1xf32>,
    %c2 = arith.constant 2 : index
    %c0_4 = arith.constant 0 : index
    %4 = vector.load %arg21[%c2, %c0_4] : memref<20x1xf32, #tpu.memory_space<vmem>>, vector<16x1xf32>
    tpu.vector_store %arg21[%c2, %c0_4], %1 {strides = array<i32>} : memref<20x1xf32, #tpu.memory_space<vmem>>, vector<16x1xf32>,
    %c0_5 = arith.constant 0 : index
    %c0_6 = arith.constant 0 : index
    %5 = vector.load %arg21[%c0_5, %c0_6] : memref<20x1xf32, #tpu.memory_space<vmem>>, vector<18x1xf32>
    %c0_7 = arith.constant 0 : index
    %c0_8 = arith.constant 0 : index
    %c0_9 = arith.constant 0 : index
    %6 = vector.load %arg2[%c0_7, %c0_8, %c0_9] : memref<3x1x64xf32, #tpu.memory_space<vmem>>, vector<1x1x64xf32>
    %7 = vector.shape_cast %6 : vector<1x1x64xf32> to vector<1x64xf32>
    %8 = vector.broadcast %5 : vector<18x1xf32> to vector<18x64xf32>
    %9 = vector.broadcast %7 : vector<1x64xf32> to vector<18x64xf32>
    %10 = arith.mulf %8, %9 : vector<18x64xf32>
    %c1 = arith.constant 1 : index
    %c0_10 = arith.constant 0 : index
    %11 = vector.load %arg21[%c1, %c0_10] : memref<20x1xf32, #tpu.memory_space<vmem>>, vector<18x1xf32>
    %c1_11 = arith.constant 1 : index
    %c0_12 = arith.constant 0 : index
    %c0_13 = arith.constant 0 : index
    %12 = vector.load %arg2[%c1_11, %c0_12, %c0_13] : memref<3x1x64xf32, #tpu.memory_space<vmem>>, vector<1x1x64xf32>
    %13 = vector.shape_cast %12 : vector<1x1x64xf32> to vector<1x64xf32>
    %14 = vector.broadcast %11 : vector<18x1xf32> to vector<18x64xf32>
    %15 = vector.broadcast %13 : vector<1x64xf32> to vector<18x64xf32>
    %16 = arith.mulf %14, %15 : vector<18x64xf32>
    %17 = arith.addf %10, %16 : vector<18x64xf32>
    %c2_14 = arith.constant 2 : index
    %c0_15 = arith.constant 0 : index
    %18 = vector.load %arg21[%c2_14, %c0_15] : memref<20x1xf32, #tpu.memory_space<vmem>>, vector<18x1xf32>
    %c2_16 = arith.constant 2 : index
    %c0_17 = arith.constant 0 : index
    %c0_18 = arith.constant 0 : index
    %19 = vector.load %arg2[%c2_16, %c0_17, %c0_18] : memref<3x1x64xf32, #tpu.memory_space<vmem>>, vector<1x1x64xf32>
    %20 = vector.shape_cast %19 : vector<1x1x64xf32> to vector<1x64xf32>
    %21 = vector.broadcast %18 : vector<18x1xf32> to vector<18x64xf32>
    %22 = vector.broadcast %20 : vector<1x64xf32> to vector<18x64xf32>
    %23 = arith.mulf %21, %22 : vector<18x64xf32>
    %24 = arith.addf %17, %23 : vector<18x64xf32>
    %c0_19 = arith.constant 0 : index
    %c0_20 = arith.constant 0 : index
    %25 = vector.load %arg3[%c0_19, %c0_20] : memref<1x64xf32, #tpu.memory_space<vmem>>, vector<1x64xf32>
    %26 = vector.broadcast %25 : vector<1x64xf32> to vector<18x64xf32>
    %27 = arith.mulf %24, %26 : vector<18x64xf32>
    %c0_21 = arith.constant 0 : index
    %c0_22 = arith.constant 0 : index
    %28 = vector.load %arg4[%c0_21, %c0_22] : memref<1x64xf32, #tpu.memory_space<vmem>>, vector<1x64xf32>
    %29 = vector.broadcast %28 : vector<1x64xf32> to vector<18x64xf32>
    %30 = arith.addf %27, %29 : vector<18x64xf32>
    %cst_23 = arith.constant 0.000000e+00 : f32
    %31 = vector.broadcast %cst_23 : f32 to vector<18x64xf32>
    %32 = arith.maximumf %30, %31 : vector<18x64xf32>
    %cst_24 = arith.constant 0.000000e+00 : f32
    %33 = vector.broadcast %cst_24 : f32 to vector<22x64xf32>
    %c0_25 = arith.constant 0 : index
    %c0_26 = arith.constant 0 : index
    %34 = vector.load %arg22[%c0_25, %c0_26] : memref<22x64xf32, #tpu.memory_space<vmem>>, vector<22x64xf32>
    tpu.vector_store %arg22[%c0_25, %c0_26], %33 {strides = array<i32>} : memref<22x64xf32, #tpu.memory_space<vmem>>, vector<22x64xf32>,
    %c2_27 = arith.constant 2 : index
    %c0_28 = arith.constant 0 : index
    %35 = vector.load %arg22[%c2_27, %c0_28] : memref<22x64xf32, #tpu.memory_space<vmem>>, vector<18x64xf32>
    tpu.vector_store %arg22[%c2_27, %c0_28], %32 {strides = array<i32>} : memref<22x64xf32, #tpu.memory_space<vmem>>, vector<18x64xf32>,
    %c0_29 = arith.constant 0 : index
    %c0_30 = arith.constant 0 : index
    %36 = vector.load %arg22[%c0_29, %c0_30] : memref<22x64xf32, #tpu.memory_space<vmem>>, vector<20x64xf32>
    %37 = arith.truncf %36 : vector<20x64xf32> to vector<20x64xbf16>
    %c0_31 = arith.constant 0 : index
    %c0_32 = arith.constant 0 : index
    %c0_33 = arith.constant 0 : index
    %38 = vector.load %arg5[%c0_31, %c0_32, %c0_33] : memref<3x64x128xbf16, #tpu.memory_space<vmem>>, vector<1x64x128xbf16>
    %39 = vector.shape_cast %38 : vector<1x64x128xbf16> to vector<64x128xbf16>
    %cst_34 = arith.constant dense<0.000000e+00> : vector<20x128xf32>
    %40 = tpu.matmul %37, %39, %cst_34 {dimension_numbers = #tpu.dot_dimension_numbers<[1], [0], [0], [1], [0, 0, 1, 1], [], []>} : vector<20x64xbf16>, vector<64x128xbf16>, vector<20x128xf32> -> vector<20x128xf32>
    %c1_35 = arith.constant 1 : index
    %c0_36 = arith.constant 0 : index
    %41 = vector.load %arg22[%c1_35, %c0_36] : memref<22x64xf32, #tpu.memory_space<vmem>>, vector<20x64xf32>
    %42 = arith.truncf %41 : vector<20x64xf32> to vector<20x64xbf16>
    %c1_37 = arith.constant 1 : index
    %c0_38 = arith.constant 0 : index
    %c0_39 = arith.constant 0 : index
    %43 = vector.load %arg5[%c1_37, %c0_38, %c0_39] : memref<3x64x128xbf16, #tpu.memory_space<vmem>>, vector<1x64x128xbf16>
    %44 = vector.shape_cast %43 : vector<1x64x128xbf16> to vector<64x128xbf16>
    %cst_40 = arith.constant dense<0.000000e+00> : vector<20x128xf32>
    %45 = tpu.matmul %42, %44, %cst_40 {dimension_numbers = #tpu.dot_dimension_numbers<[1], [0], [0], [1], [0, 0, 1, 1], [], []>} : vector<20x64xbf16>, vector<64x128xbf16>, vector<20x128xf32> -> vector<20x128xf32>
    %46 = arith.addf %40, %45 : vector<20x128xf32>
    %c2_41 = arith.constant 2 : index
    %c0_42 = arith.constant 0 : index
    %47 = vector.load %arg22[%c2_41, %c0_42] : memref<22x64xf32, #tpu.memory_space<vmem>>, vector<20x64xf32>
    %48 = arith.truncf %47 : vector<20x64xf32> to vector<20x64xbf16>
    %c2_43 = arith.constant 2 : index
    %c0_44 = arith.constant 0 : index
    %c0_45 = arith.constant 0 : index
    %49 = vector.load %arg5[%c2_43, %c0_44, %c0_45] : memref<3x64x128xbf16, #tpu.memory_space<vmem>>, vector<1x64x128xbf16>
    %50 = vector.shape_cast %49 : vector<1x64x128xbf16> to vector<64x128xbf16>
    %cst_46 = arith.constant dense<0.000000e+00> : vector<20x128xf32>
    %51 = tpu.matmul %48, %50, %cst_46 {dimension_numbers = #tpu.dot_dimension_numbers<[1], [0], [0], [1], [0, 0, 1, 1], [], []>} : vector<20x64xbf16>, vector<64x128xbf16>, vector<20x128xf32> -> vector<20x128xf32>
    %52 = arith.addf %46, %51 : vector<20x128xf32>
    %c0_47 = arith.constant 0 : index
    %c0_48 = arith.constant 0 : index
    %53 = vector.load %arg6[%c0_47, %c0_48] : memref<1x128xf32, #tpu.memory_space<vmem>>, vector<1x128xf32>
    %54 = vector.broadcast %53 : vector<1x128xf32> to vector<20x128xf32>
    %55 = arith.mulf %52, %54 : vector<20x128xf32>
    %c0_49 = arith.constant 0 : index
    %c0_50 = arith.constant 0 : index
    %56 = vector.load %arg7[%c0_49, %c0_50] : memref<1x128xf32, #tpu.memory_space<vmem>>, vector<1x128xf32>
    %57 = vector.broadcast %56 : vector<1x128xf32> to vector<20x128xf32>
    %58 = arith.addf %55, %57 : vector<20x128xf32>
    %cst_51 = arith.constant 0.000000e+00 : f32
    %59 = vector.broadcast %cst_51 : f32 to vector<20x128xf32>
    %60 = arith.maximumf %58, %59 : vector<20x128xf32>
    %cst_52 = arith.constant 0.000000e+00 : f32
    %61 = vector.broadcast %cst_52 : f32 to vector<24x128xf32>
    %c0_53 = arith.constant 0 : index
    %c0_54 = arith.constant 0 : index
    %62 = vector.load %arg23[%c0_53, %c0_54] : memref<24x128xf32, #tpu.memory_space<vmem>>, vector<24x128xf32>
    tpu.vector_store %arg23[%c0_53, %c0_54], %61 {strides = array<i32>} : memref<24x128xf32, #tpu.memory_space<vmem>>, vector<24x128xf32>,
    %c2_55 = arith.constant 2 : index
    %c0_56 = arith.constant 0 : index
    %63 = vector.load %arg23[%c2_55, %c0_56] : memref<24x128xf32, #tpu.memory_space<vmem>>, vector<20x128xf32>
    tpu.vector_store %arg23[%c2_55, %c0_56], %60 {strides = array<i32>} : memref<24x128xf32, #tpu.memory_space<vmem>>, vector<20x128xf32>,
    %c0_57 = arith.constant 0 : index
    %c0_58 = arith.constant 0 : index
    %64 = vector.load %arg23[%c0_57, %c0_58] : memref<24x128xf32, #tpu.memory_space<vmem>>, vector<22x128xf32>
    %65 = arith.truncf %64 : vector<22x128xf32> to vector<22x128xbf16>
    %c0_59 = arith.constant 0 : index
    %c0_60 = arith.constant 0 : index
    %c0_61 = arith.constant 0 : index
    %66 = vector.load %arg8[%c0_59, %c0_60, %c0_61] : memref<3x128x128xbf16, #tpu.memory_space<vmem>>, vector<1x128x128xbf16>
    %67 = vector.shape_cast %66 : vector<1x128x128xbf16> to vector<128x128xbf16>
    %cst_62 = arith.constant dense<0.000000e+00> : vector<22x128xf32>
    %68 = tpu.matmul %65, %67, %cst_62 {dimension_numbers = #tpu.dot_dimension_numbers<[1], [0], [0], [1], [0, 0, 1, 1], [], []>} : vector<22x128xbf16>, vector<128x128xbf16>, vector<22x128xf32> -> vector<22x128xf32>
    %c1_63 = arith.constant 1 : index
    %c0_64 = arith.constant 0 : index
    %69 = vector.load %arg23[%c1_63, %c0_64] : memref<24x128xf32, #tpu.memory_space<vmem>>, vector<22x128xf32>
    %70 = arith.truncf %69 : vector<22x128xf32> to vector<22x128xbf16>
    %c1_65 = arith.constant 1 : index
    %c0_66 = arith.constant 0 : index
    %c0_67 = arith.constant 0 : index
    %71 = vector.load %arg8[%c1_65, %c0_66, %c0_67] : memref<3x128x128xbf16, #tpu.memory_space<vmem>>, vector<1x128x128xbf16>
    %72 = vector.shape_cast %71 : vector<1x128x128xbf16> to vector<128x128xbf16>
    %cst_68 = arith.constant dense<0.000000e+00> : vector<22x128xf32>
    %73 = tpu.matmul %70, %72, %cst_68 {dimension_numbers = #tpu.dot_dimension_numbers<[1], [0], [0], [1], [0, 0, 1, 1], [], []>} : vector<22x128xbf16>, vector<128x128xbf16>, vector<22x128xf32> -> vector<22x128xf32>
    %74 = arith.addf %68, %73 : vector<22x128xf32>
    %c2_69 = arith.constant 2 : index
    %c0_70 = arith.constant 0 : index
    %75 = vector.load %arg23[%c2_69, %c0_70] : memref<24x128xf32, #tpu.memory_space<vmem>>, vector<22x128xf32>
    %76 = arith.truncf %75 : vector<22x128xf32> to vector<22x128xbf16>
    %c2_71 = arith.constant 2 : index
    %c0_72 = arith.constant 0 : index
    %c0_73 = arith.constant 0 : index
    %77 = vector.load %arg8[%c2_71, %c0_72, %c0_73] : memref<3x128x128xbf16, #tpu.memory_space<vmem>>, vector<1x128x128xbf16>
    %78 = vector.shape_cast %77 : vector<1x128x128xbf16> to vector<128x128xbf16>
    %cst_74 = arith.constant dense<0.000000e+00> : vector<22x128xf32>
    %79 = tpu.matmul %76, %78, %cst_74 {dimension_numbers = #tpu.dot_dimension_numbers<[1], [0], [0], [1], [0, 0, 1, 1], [], []>} : vector<22x128xbf16>, vector<128x128xbf16>, vector<22x128xf32> -> vector<22x128xf32>
    %80 = arith.addf %74, %79 : vector<22x128xf32>
    %c0_75 = arith.constant 0 : index
    %c0_76 = arith.constant 0 : index
    %81 = vector.load %arg9[%c0_75, %c0_76] : memref<1x128xf32, #tpu.memory_space<vmem>>, vector<1x128xf32>
    %82 = vector.broadcast %81 : vector<1x128xf32> to vector<22x128xf32>
    %83 = arith.mulf %80, %82 : vector<22x128xf32>
    %c0_77 = arith.constant 0 : index
    %c0_78 = arith.constant 0 : index
    %84 = vector.load %arg10[%c0_77, %c0_78] : memref<1x128xf32, #tpu.memory_space<vmem>>, vector<1x128xf32>
    %85 = vector.broadcast %84 : vector<1x128xf32> to vector<22x128xf32>
    %86 = arith.addf %83, %85 : vector<22x128xf32>
    %cst_79 = arith.constant 0.000000e+00 : f32
    %87 = vector.broadcast %cst_79 : f32 to vector<22x128xf32>
    %88 = arith.maximumf %86, %87 : vector<22x128xf32>
    %cst_80 = arith.constant 0.000000e+00 : f32
    %89 = vector.broadcast %cst_80 : f32 to vector<26x128xf32>
    %c0_81 = arith.constant 0 : index
    %c0_82 = arith.constant 0 : index
    %90 = vector.load %arg24[%c0_81, %c0_82] : memref<26x128xf32, #tpu.memory_space<vmem>>, vector<26x128xf32>
    tpu.vector_store %arg24[%c0_81, %c0_82], %89 {strides = array<i32>} : memref<26x128xf32, #tpu.memory_space<vmem>>, vector<26x128xf32>,
    %c2_83 = arith.constant 2 : index
    %c0_84 = arith.constant 0 : index
    %91 = vector.load %arg24[%c2_83, %c0_84] : memref<26x128xf32, #tpu.memory_space<vmem>>, vector<22x128xf32>
    tpu.vector_store %arg24[%c2_83, %c0_84], %88 {strides = array<i32>} : memref<26x128xf32, #tpu.memory_space<vmem>>, vector<22x128xf32>,
    %c0_85 = arith.constant 0 : index
    %c0_86 = arith.constant 0 : index
    %92 = vector.load %arg24[%c0_85, %c0_86] : memref<26x128xf32, #tpu.memory_space<vmem>>, vector<24x128xf32>
    %93 = arith.truncf %92 : vector<24x128xf32> to vector<24x128xbf16>
    %c0_87 = arith.constant 0 : index
    %c0_88 = arith.constant 0 : index
    %c0_89 = arith.constant 0 : index
    %94 = vector.load %arg11[%c0_87, %c0_88, %c0_89] : memref<3x128x128xbf16, #tpu.memory_space<vmem>>, vector<1x128x128xbf16>
    %95 = vector.shape_cast %94 : vector<1x128x128xbf16> to vector<128x128xbf16>
    %cst_90 = arith.constant dense<0.000000e+00> : vector<24x128xf32>
    %96 = tpu.matmul %93, %95, %cst_90 {dimension_numbers = #tpu.dot_dimension_numbers<[1], [0], [0], [1], [0, 0, 1, 1], [], []>} : vector<24x128xbf16>, vector<128x128xbf16>, vector<24x128xf32> -> vector<24x128xf32>
    %c1_91 = arith.constant 1 : index
    %c0_92 = arith.constant 0 : index
    %97 = vector.load %arg24[%c1_91, %c0_92] : memref<26x128xf32, #tpu.memory_space<vmem>>, vector<24x128xf32>
    %98 = arith.truncf %97 : vector<24x128xf32> to vector<24x128xbf16>
    %c1_93 = arith.constant 1 : index
    %c0_94 = arith.constant 0 : index
    %c0_95 = arith.constant 0 : index
    %99 = vector.load %arg11[%c1_93, %c0_94, %c0_95] : memref<3x128x128xbf16, #tpu.memory_space<vmem>>, vector<1x128x128xbf16>
    %100 = vector.shape_cast %99 : vector<1x128x128xbf16> to vector<128x128xbf16>
    %cst_96 = arith.constant dense<0.000000e+00> : vector<24x128xf32>
    %101 = tpu.matmul %98, %100, %cst_96 {dimension_numbers = #tpu.dot_dimension_numbers<[1], [0], [0], [1], [0, 0, 1, 1], [], []>} : vector<24x128xbf16>, vector<128x128xbf16>, vector<24x128xf32> -> vector<24x128xf32>
    %102 = arith.addf %96, %101 : vector<24x128xf32>
    %c2_97 = arith.constant 2 : index
    %c0_98 = arith.constant 0 : index
    %103 = vector.load %arg24[%c2_97, %c0_98] : memref<26x128xf32, #tpu.memory_space<vmem>>, vector<24x128xf32>
    %104 = arith.truncf %103 : vector<24x128xf32> to vector<24x128xbf16>
    %c2_99 = arith.constant 2 : index
    %c0_100 = arith.constant 0 : index
    %c0_101 = arith.constant 0 : index
    %105 = vector.load %arg11[%c2_99, %c0_100, %c0_101] : memref<3x128x128xbf16, #tpu.memory_space<vmem>>, vector<1x128x128xbf16>
    %106 = vector.shape_cast %105 : vector<1x128x128xbf16> to vector<128x128xbf16>
    %cst_102 = arith.constant dense<0.000000e+00> : vector<24x128xf32>
    %107 = tpu.matmul %104, %106, %cst_102 {dimension_numbers = #tpu.dot_dimension_numbers<[1], [0], [0], [1], [0, 0, 1, 1], [], []>} : vector<24x128xbf16>, vector<128x128xbf16>, vector<24x128xf32> -> vector<24x128xf32>
    %108 = arith.addf %102, %107 : vector<24x128xf32>
    %c0_103 = arith.constant 0 : index
    %c0_104 = arith.constant 0 : index
    %109 = vector.load %arg12[%c0_103, %c0_104] : memref<1x128xf32, #tpu.memory_space<vmem>>, vector<1x128xf32>
    %110 = vector.broadcast %109 : vector<1x128xf32> to vector<24x128xf32>
    %111 = arith.mulf %108, %110 : vector<24x128xf32>
    %c0_105 = arith.constant 0 : index
    %c0_106 = arith.constant 0 : index
    %112 = vector.load %arg13[%c0_105, %c0_106] : memref<1x128xf32, #tpu.memory_space<vmem>>, vector<1x128xf32>
    %113 = vector.broadcast %112 : vector<1x128xf32> to vector<24x128xf32>
    %114 = arith.addf %111, %113 : vector<24x128xf32>
    %cst_107 = arith.constant 0.000000e+00 : f32
    %115 = vector.broadcast %cst_107 : f32 to vector<24x128xf32>
    %116 = arith.maximumf %114, %115 : vector<24x128xf32>
    %c0_108 = arith.constant 0 : index
    %c0_109 = arith.constant 0 : index
    %117 = vector.load %arg25[%c0_108, %c0_109] : memref<24x128xf32, #tpu.memory_space<vmem>>, vector<24x128xf32>
    tpu.vector_store %arg25[%c0_108, %c0_109], %116 {strides = array<i32>} : memref<24x128xf32, #tpu.memory_space<vmem>>, vector<24x128xf32>,
    %cst_110 = arith.constant 0.000000e+00 : f32
    %118 = vector.broadcast %cst_110 : f32 to vector<1x128xf32>
    %c0_i32 = arith.constant 0 : i32
    %c24_i32 = arith.constant 24 : i32
    %119 = arith.addi %c0_i32, %c24_i32 : i32
    %c1_i32 = arith.constant 1 : i32
    %120:4 = scf.for %arg26 = %c0_i32 to %119 step %c1_i32 iter_args(%arg27 = %118, %arg28 = %118, %arg29 = %118, %arg30 = %118) -> (vector<1x128xf32>, vector<1x128xf32>, vector<1x128xf32>, vector<1x128xf32>)  : i32 {
      %124 = arith.index_cast %arg26 : i32 to index
      %c0_115 = arith.constant 0 : index
      %125 = vector.load %arg25[%124, %c0_115] : memref<24x128xf32, #tpu.memory_space<vmem>>, vector<1x128xf32>
      %126 = arith.truncf %125 : vector<1x128xf32> to vector<1x128xbf16>
      %c0_116 = arith.constant 0 : index
      %c0_117 = arith.constant 0 : index
      %127 = vector.load %arg14[%c0_116, %c0_117] : memref<128x512xbf16, #tpu.memory_space<vmem>>, vector<128x512xbf16>
      %cst_118 = arith.constant dense<0.000000e+00> : vector<1x512xf32>
      %128 = tpu.matmul %126, %127, %cst_118 {dimension_numbers = #tpu.dot_dimension_numbers<[1], [0], [0], [1], [0, 0, 1, 1], [], []>} : vector<1x128xbf16>, vector<128x512xbf16>, vector<1x512xf32> -> vector<1x512xf32>
      %129 = arith.truncf %arg27 : vector<1x128xf32> to vector<1x128xbf16>
      %c0_119 = arith.constant 0 : index
      %c0_120 = arith.constant 0 : index
      %130 = vector.load %arg15[%c0_119, %c0_120] : memref<128x512xbf16, #tpu.memory_space<vmem>>, vector<128x512xbf16>
      %cst_121 = arith.constant dense<0.000000e+00> : vector<1x512xf32>
      %131 = tpu.matmul %129, %130, %cst_121 {dimension_numbers = #tpu.dot_dimension_numbers<[1], [0], [0], [1], [0, 0, 1, 1], [], []>} : vector<1x128xbf16>, vector<128x512xbf16>, vector<1x512xf32> -> vector<1x512xf32>
      %132 = arith.addf %128, %131 : vector<1x512xf32>
      %c0_122 = arith.constant 0 : index
      %c0_123 = arith.constant 0 : index
      %133 = vector.load %arg16[%c0_122, %c0_123] : memref<1x512xf32, #tpu.memory_space<vmem>>, vector<1x512xf32>
      %134 = arith.addf %132, %133 : vector<1x512xf32>
      %135 = vector.extract_strided_slice %134 {offsets = [0, 0], sizes = [1, 128], strides = [1, 1]} : vector<1x512xf32> to vector<1x128xf32>
      %cst_124 = arith.constant 0.000000e+00 : f32
      %136 = vector.broadcast %cst_124 : f32 to vector<1x128xf32>
      %137 = arith.subf %136, %135 : vector<1x128xf32>
      %138 = math.exp %137 : vector<1x128xf32>
      %cst_125 = arith.constant 1.000000e+00 : f32
      %139 = vector.broadcast %cst_125 : f32 to vector<1x128xf32>
      %140 = arith.addf %139, %138 : vector<1x128xf32>
      %cst_126 = arith.constant 1.000000e+00 : f32
      %141 = vector.broadcast %cst_126 : f32 to vector<1x128xf32>
      %142 = arith.divf %141, %140 : vector<1x128xf32>
      %143 = vector.extract_strided_slice %134 {offsets = [0, 128], sizes = [1, 128], strides = [1, 1]} : vector<1x512xf32> to vector<1x128xf32>
      %cst_127 = arith.constant 0.000000e+00 : f32
      %144 = vector.broadcast %cst_127 : f32 to vector<1x128xf32>
      %145 = arith.subf %144, %143 : vector<1x128xf32>
      %146 = math.exp %145 : vector<1x128xf32>
      %cst_128 = arith.constant 1.000000e+00 : f32
      %147 = vector.broadcast %cst_128 : f32 to vector<1x128xf32>
      %148 = arith.addf %147, %146 : vector<1x128xf32>
      %cst_129 = arith.constant 1.000000e+00 : f32
      %149 = vector.broadcast %cst_129 : f32 to vector<1x128xf32>
      %150 = arith.divf %149, %148 : vector<1x128xf32>
      %151 = vector.extract_strided_slice %134 {offsets = [0, 256], sizes = [1, 128], strides = [1, 1]} : vector<1x512xf32> to vector<1x128xf32>
      %152 = math.tanh %151 : vector<1x128xf32>
      %153 = vector.extract_strided_slice %134 {offsets = [0, 384], sizes = [1, 128], strides = [1, 1]} : vector<1x512xf32> to vector<1x128xf32>
      %cst_130 = arith.constant 0.000000e+00 : f32
      %154 = vector.broadcast %cst_130 : f32 to vector<1x128xf32>
      %155 = arith.subf %154, %153 : vector<1x128xf32>
      %156 = math.exp %155 : vector<1x128xf32>
      %cst_131 = arith.constant 1.000000e+00 : f32
      %157 = vector.broadcast %cst_131 : f32 to vector<1x128xf32>
      %158 = arith.addf %157, %156 : vector<1x128xf32>
      %cst_132 = arith.constant 1.000000e+00 : f32
      %159 = vector.broadcast %cst_132 : f32 to vector<1x128xf32>
      %160 = arith.divf %159, %158 : vector<1x128xf32>
      %161 = arith.mulf %150, %arg28 : vector<1x128xf32>
      %162 = arith.mulf %142, %152 : vector<1x128xf32>
      %163 = arith.addf %161, %162 : vector<1x128xf32>
      %164 = math.tanh %163 : vector<1x128xf32>
      %165 = arith.mulf %160, %164 : vector<1x128xf32>
      %166 = arith.truncf %165 : vector<1x128xf32> to vector<1x128xbf16>
      %c0_133 = arith.constant 0 : index
      %c0_134 = arith.constant 0 : index
      %167 = vector.load %arg17[%c0_133, %c0_134] : memref<128x512xbf16, #tpu.memory_space<vmem>>, vector<128x512xbf16>
      %cst_135 = arith.constant dense<0.000000e+00> : vector<1x512xf32>
      %168 = tpu.matmul %166, %167, %cst_135 {dimension_numbers = #tpu.dot_dimension_numbers<[1], [0], [0], [1], [0, 0, 1, 1], [], []>} : vector<1x128xbf16>, vector<128x512xbf16>, vector<1x512xf32> -> vector<1x512xf32>
      %169 = arith.truncf %arg29 : vector<1x128xf32> to vector<1x128xbf16>
      %c0_136 = arith.constant 0 : index
      %c0_137 = arith.constant 0 : index
      %170 = vector.load %arg18[%c0_136, %c0_137] : memref<128x512xbf16, #tpu.memory_space<vmem>>, vector<128x512xbf16>
      %cst_138 = arith.constant dense<0.000000e+00> : vector<1x512xf32>
      %171 = tpu.matmul %169, %170, %cst_138 {dimension_numbers = #tpu.dot_dimension_numbers<[1], [0], [0], [1], [0, 0, 1, 1], [], []>} : vector<1x128xbf16>, vector<128x512xbf16>, vector<1x512xf32> -> vector<1x512xf32>
      %172 = arith.addf %168, %171 : vector<1x512xf32>
      %c0_139 = arith.constant 0 : index
      %c0_140 = arith.constant 0 : index
      %173 = vector.load %arg19[%c0_139, %c0_140] : memref<1x512xf32, #tpu.memory_space<vmem>>, vector<1x512xf32>
      %174 = arith.addf %172, %173 : vector<1x512xf32>
      %175 = vector.extract_strided_slice %174 {offsets = [0, 0], sizes = [1, 128], strides = [1, 1]} : vector<1x512xf32> to vector<1x128xf32>
      %cst_141 = arith.constant 0.000000e+00 : f32
      %176 = vector.broadcast %cst_141 : f32 to vector<1x128xf32>
      %177 = arith.subf %176, %175 : vector<1x128xf32>
      %178 = math.exp %177 : vector<1x128xf32>
      %cst_142 = arith.constant 1.000000e+00 : f32
      %179 = vector.broadcast %cst_142 : f32 to vector<1x128xf32>
      %180 = arith.addf %179, %178 : vector<1x128xf32>
      %cst_143 = arith.constant 1.000000e+00 : f32
      %181 = vector.broadcast %cst_143 : f32 to vector<1x128xf32>
      %182 = arith.divf %181, %180 : vector<1x128xf32>
      %183 = vector.extract_strided_slice %174 {offsets = [0, 128], sizes = [1, 128], strides = [1, 1]} : vector<1x512xf32> to vector<1x128xf32>
      %cst_144 = arith.constant 0.000000e+00 : f32
      %184 = vector.broadcast %cst_144 : f32 to vector<1x128xf32>
      %185 = arith.subf %184, %183 : vector<1x128xf32>
      %186 = math.exp %185 : vector<1x128xf32>
      %cst_145 = arith.constant 1.000000e+00 : f32
      %187 = vector.broadcast %cst_145 : f32 to vector<1x128xf32>
      %188 = arith.addf %187, %186 : vector<1x128xf32>
      %cst_146 = arith.constant 1.000000e+00 : f32
      %189 = vector.broadcast %cst_146 : f32 to vector<1x128xf32>
      %190 = arith.divf %189, %188 : vector<1x128xf32>
      %191 = vector.extract_strided_slice %174 {offsets = [0, 256], sizes = [1, 128], strides = [1, 1]} : vector<1x512xf32> to vector<1x128xf32>
      %192 = math.tanh %191 : vector<1x128xf32>
      %193 = vector.extract_strided_slice %174 {offsets = [0, 384], sizes = [1, 128], strides = [1, 1]} : vector<1x512xf32> to vector<1x128xf32>
      %cst_147 = arith.constant 0.000000e+00 : f32
      %194 = vector.broadcast %cst_147 : f32 to vector<1x128xf32>
      %195 = arith.subf %194, %193 : vector<1x128xf32>
      %196 = math.exp %195 : vector<1x128xf32>
      %cst_148 = arith.constant 1.000000e+00 : f32
      %197 = vector.broadcast %cst_148 : f32 to vector<1x128xf32>
      %198 = arith.addf %197, %196 : vector<1x128xf32>
      %cst_149 = arith.constant 1.000000e+00 : f32
      %199 = vector.broadcast %cst_149 : f32 to vector<1x128xf32>
      %200 = arith.divf %199, %198 : vector<1x128xf32>
      %201 = arith.mulf %190, %arg30 : vector<1x128xf32>
      %202 = arith.mulf %182, %192 : vector<1x128xf32>
      %203 = arith.addf %201, %202 : vector<1x128xf32>
      %204 = math.tanh %203 : vector<1x128xf32>
      %205 = arith.mulf %200, %204 : vector<1x128xf32>
      scf.yield %165, %163, %205, %203 : vector<1x128xf32>, vector<1x128xf32>, vector<1x128xf32>, vector<1x128xf32>
    }
    %c24_i32_111 = arith.constant 24 : i32
    %c0_112 = arith.constant 0 : index
    %c0_113 = arith.constant 0 : index
    %c0_114 = arith.constant 0 : index
    %121 = vector.load %arg20[%c0_112, %c0_113, %c0_114] : memref<1x1x128xf32, #tpu.memory_space<vmem>>, vector<1x1x128xf32>
    %122 = vector.shape_cast %121 : vector<1x1x128xf32> to vector<1x128xf32>
    %123 = vector.shape_cast %120#2 : vector<1x128xf32> to vector<1x1x128xf32>
    tpu.vector_store %arg20[%c0_112, %c0_113, %c0_114], %123 {strides = array<i32>} : memref<1x1x128xf32, #tpu.memory_space<vmem>>, vector<1x1x128xf32>,
    return
  }
  func.func @transform_0(%arg0: i32) -> (i32, i32, i32) {
    %c0_i32 = arith.constant 0 : i32
    %c0_i32_0 = arith.constant 0 : i32
    %c0_i32_1 = arith.constant 0 : i32
    return %arg0, %c0_i32, %c0_i32_0 : i32, i32, i32
  }
  func.func @transform_1(%arg0: i32) -> (i32, i32, i32) {
    %c0_i32 = arith.constant 0 : i32
    %c0_i32_0 = arith.constant 0 : i32
    %c0_i32_1 = arith.constant 0 : i32
    %c0_i32_2 = arith.constant 0 : i32
    return %c0_i32, %c0_i32_0, %c0_i32_1 : i32, i32, i32
  }
  func.func @transform_2(%arg0: i32) -> (i32, i32) {
    %c0_i32 = arith.constant 0 : i32
    %c0_i32_0 = arith.constant 0 : i32
    %c0_i32_1 = arith.constant 0 : i32
    return %c0_i32, %c0_i32_0 : i32, i32
  }
  func.func @transform_3(%arg0: i32) -> (i32, i32) {
    %c0_i32 = arith.constant 0 : i32
    %c0_i32_0 = arith.constant 0 : i32
    %c0_i32_1 = arith.constant 0 : i32
    return %c0_i32, %c0_i32_0 : i32, i32
  }
  func.func @transform_4(%arg0: i32) -> (i32, i32, i32) {
    %c0_i32 = arith.constant 0 : i32
    %c0_i32_0 = arith.constant 0 : i32
    %c0_i32_1 = arith.constant 0 : i32
    %c0_i32_2 = arith.constant 0 : i32
    return %c0_i32, %c0_i32_0, %c0_i32_1 : i32, i32, i32
  }
  func.func @transform_5(%arg0: i32) -> (i32, i32) {
    %c0_i32 = arith.constant 0 : i32
    %c0_i32_0 = arith.constant 0 : i32
    %c0_i32_1 = arith.constant 0 : i32
    return %c0_i32, %c0_i32_0 : i32, i32
  }
  func.func @transform_6(%arg0: i32) -> (i32, i32) {
    %c0_i32 = arith.constant 0 : i32
    %c0_i32_0 = arith.constant 0 : i32
    %c0_i32_1 = arith.constant 0 : i32
    return %c0_i32, %c0_i32_0 : i32, i32
  }
  func.func @transform_7(%arg0: i32) -> (i32, i32, i32) {
    %c0_i32 = arith.constant 0 : i32
    %c0_i32_0 = arith.constant 0 : i32
    %c0_i32_1 = arith.constant 0 : i32
    %c0_i32_2 = arith.constant 0 : i32
    return %c0_i32, %c0_i32_0, %c0_i32_1 : i32, i32, i32
  }
  func.func @transform_8(%arg0: i32) -> (i32, i32) {
    %c0_i32 = arith.constant 0 : i32
    %c0_i32_0 = arith.constant 0 : i32
    %c0_i32_1 = arith.constant 0 : i32
    return %c0_i32, %c0_i32_0 : i32, i32
  }
  func.func @transform_9(%arg0: i32) -> (i32, i32) {
    %c0_i32 = arith.constant 0 : i32
    %c0_i32_0 = arith.constant 0 : i32
    %c0_i32_1 = arith.constant 0 : i32
    return %c0_i32, %c0_i32_0 : i32, i32
  }
  func.func @transform_10(%arg0: i32) -> (i32, i32, i32) {
    %c0_i32 = arith.constant 0 : i32
    %c0_i32_0 = arith.constant 0 : i32
    %c0_i32_1 = arith.constant 0 : i32
    %c0_i32_2 = arith.constant 0 : i32
    return %c0_i32, %c0_i32_0, %c0_i32_1 : i32, i32, i32
  }
  func.func @transform_11(%arg0: i32) -> (i32, i32) {
    %c0_i32 = arith.constant 0 : i32
    %c0_i32_0 = arith.constant 0 : i32
    %c0_i32_1 = arith.constant 0 : i32
    return %c0_i32, %c0_i32_0 : i32, i32
  }
  func.func @transform_12(%arg0: i32) -> (i32, i32) {
    %c0_i32 = arith.constant 0 : i32
    %c0_i32_0 = arith.constant 0 : i32
    %c0_i32_1 = arith.constant 0 : i32
    return %c0_i32, %c0_i32_0 : i32, i32
  }
  func.func @transform_13(%arg0: i32) -> (i32, i32) {
    %c0_i32 = arith.constant 0 : i32
    %c0_i32_0 = arith.constant 0 : i32
    %c0_i32_1 = arith.constant 0 : i32
    return %c0_i32, %c0_i32_0 : i32, i32
  }
  func.func @transform_14(%arg0: i32) -> (i32, i32) {
    %c0_i32 = arith.constant 0 : i32
    %c0_i32_0 = arith.constant 0 : i32
    %c0_i32_1 = arith.constant 0 : i32
    return %c0_i32, %c0_i32_0 : i32, i32
  }
  func.func @transform_15(%arg0: i32) -> (i32, i32) {
    %c0_i32 = arith.constant 0 : i32
    %c0_i32_0 = arith.constant 0 : i32
    %c0_i32_1 = arith.constant 0 : i32
    return %c0_i32, %c0_i32_0 : i32, i32
  }
  func.func @transform_16(%arg0: i32) -> (i32, i32) {
    %c0_i32 = arith.constant 0 : i32
    %c0_i32_0 = arith.constant 0 : i32
    %c0_i32_1 = arith.constant 0 : i32
    return %c0_i32, %c0_i32_0 : i32, i32
  }
  func.func @transform_17(%arg0: i32) -> (i32, i32) {
    %c0_i32 = arith.constant 0 : i32
    %c0_i32_0 = arith.constant 0 : i32
    %c0_i32_1 = arith.constant 0 : i32
    return %c0_i32, %c0_i32_0 : i32, i32
  }
  func.func @transform_18(%arg0: i32) -> (i32, i32) {
    %c0_i32 = arith.constant 0 : i32
    %c0_i32_0 = arith.constant 0 : i32
    %c0_i32_1 = arith.constant 0 : i32
    return %c0_i32, %c0_i32_0 : i32, i32
  }
  func.func @transform_19(%arg0: i32) -> (i32, i32, i32) {
    %c0_i32 = arith.constant 0 : i32
    %c0_i32_0 = arith.constant 0 : i32
    %c0_i32_1 = arith.constant 0 : i32
    return %arg0, %c0_i32, %c0_i32_0 : i32, i32, i32
  }
}

</mosaic_0001>

<bundles_post_ra>
// kernel: _lambda_.1
= control target key start
LH: loop header
LB: loop body
LE: loop exit
PB: predicated region body
PF: predicated region fallthrough
CT: control target
= control target key end

     0   :  { %s5041_s0 = inlined_call_operand.vmem [shape: f32[2,16,1], index: 0, kind: input, shape index: {}]   ;;  %s5042_s1 = inlined_call_operand.vmem [shape: f32[3,1,64], index: 1, kind: input, shape index: {}]   ;;  %s5043_s2 = inlined_call_operand.vmem [shape: f32[1,64], index: 2, kind: input, shape index: {}]   ;;  %s5044_s3 = inlined_call_operand.vmem [shape: f32[1,64], index: 3, kind: input, shape index: {}]   ;;  %s5045_s4 = inlined_call_operand.vmem [shape: bf16[3,64,128], index: 4, kind: input, shape index: {}]   ;;  %s5046_s5 = inlined_call_operand.vmem [shape: f32[1,128], index: 5, kind: input, shape index: {}]   ;;  %s5047_s6 = inlined_call_operand.vmem [shape: f32[1,128], index: 6, kind: input, shape index: {}]   ;;  %s5048_s7 = inlined_call_operand.vmem [shape: bf16[3,128,128], index: 7, kind: input, shape index: {}]   ;;  %s5049_s8 = inlined_call_operand.vmem [shape: f32[1,128], index: 8, kind: input, shape index: {}]   ;;  %s5050_s9 = inlined_call_operand.vmem [shape: f32[1,128], index: 9, kind: input, shape index: {}]   ;;  %s5051_s10 = inlined_call_operand.vmem [shape: bf16[3,128,128], index: 10, kind: input, shape index: {}]   ;;  %s5052_s11 = inlined_call_operand.vmem [shape: f32[1,128], index: 11, kind: input, shape index: {}]   ;;  %s5053_s12 = inlined_call_operand.vmem [shape: f32[1,128], index: 12, kind: input, shape index: {}]   ;;  %s5054_s13 = inlined_call_operand.vmem [shape: bf16[128,512], index: 13, kind: input, shape index: {}]   ;;  %s5055_s14 = inlined_call_operand.vmem [shape: bf16[128,512], index: 14, kind: input, shape index: {}]   ;;  %s5056_s15 = inlined_call_operand.vmem [shape: f32[1,512], index: 15, kind: input, shape index: {}]   ;;  %s5057_s16 = inlined_call_operand.vmem [shape: bf16[128,512], index: 16, kind: input, shape index: {}]   ;;  %s5058_s17 = inlined_call_operand.vmem [shape: bf16[128,512], index: 17, kind: input, shape index: {}]   ;;  %s5059_s18 = inlined_call_operand.vmem [shape: f32[1,512], index: 18, kind: input, shape index: {}]   ;;  %s5060_s19 = inlined_call_operand.hbm [shape: f32[2,1,128], index: 19, kind: output, shape index: {}]  }
   0x1   :  { %5066 = sst [smem:[#allocation14_spill]] %s5041_s0 }
   0x2   :  { %5067 = sst [smem:[#allocation15_spill]] %s5042_s1 }
   0x3   :  { %5068 = sst [smem:[#allocation16_spill]] %s5043_s2 }
   0x4   :  { %5069 = sst [smem:[#allocation17_spill]] %s5044_s3 }
   0x5   :  { %5070 = sst [smem:[#allocation18_spill]] %s5045_s4 }
   0x6   :  { %5071 = sst [smem:[#allocation19_spill]] %s5046_s5 }
   0x7   :  { %5072 = sst [smem:[#allocation20_spill]] %s5047_s6 }
   0x8   :  { %5073 = sst [smem:[#allocation21_spill]] %s5048_s7 }
   0x9   :  { %24 = vsyncpa [#allocation8], 0 }
   0xa   :  { %26 = vsyncpa [#allocation8 + $0x1], 0  ;;  %s4238_s0 = smov 0   ;;  %s4240_s30 = smov 0  }
   0xb   :  { %s4242_s20 = smov 0   ;;  %s4244_s21 = smov 0  }
   0xc LB: > { %5074 = sst [smem:[#allocation10_spill]] %s4108_s20  ;;  %s4259_s1 = sadd.s32 4294967295, %s4112_s21   ;;  %s4112_s21 = sphi %s4244_s21, %s5092_s21   ;;  %s4108_s20 = sphi %s4242_s20, %s5094_s20   ;;  %s4104_s30 = sphi %s4240_s30, %s5096_s30   ;;  %s4100_s0 = sphi %s4238_s0, %s5095_s0  }
   0xd   : > { %s3108_s22 = sadd.s32 4294967294, %s4112_s21   ;;  %s4263_s2 = sadd.s32 1, %s4112_s21  }
   0xe   : > { %5075 = sst [smem:[#allocation11_spill]] %s4263_s2  ;;  %s443_s23 = sadd.s32 1, %s4108_s20 }
   0xf   : > { %s440_s24 = ssub.s32 %s4112_s21, %s4263_s2  ;;  %p453_p0 = scmp.ne.s32.totalorder %s4108_s20, %s4104_s30 }
  0x10   : > { %p441_p1 = scmp.eq.s32.totalorder %s440_s24, 0  ;;  %p454_p2 = scmp.eq.s32.totalorder %s4259_s1, 1 }
  0x11   : > { %p459_p3 = scmp.ne.s32.totalorder %s4104_s30, %s4100_s0  ;;  %p460_p4 = scmp.eq.s32.totalorder %s3108_s22, 1 }
  0x12   : > { %s4274_s25 = scalar_select %p441_p1, %s4108_s20, %s443_s23  }
  0x13   : > { %p4276_p5 = por %p454_p2, %p453_p0  ;;  %p4280_p6 = por %p460_p4, %p459_p3 }
  0x14   : > { %5076 = sst [smem:[#allocation12_spill]] %s4274_s25  ;;  %p3111_p7 = scmp.ge.s32.totalorder %s4112_s21, 1 }
  0x15   : > { %s5078_s26 = scalar_select %p4280_p6, 1, 0 }
  0x16   : > { %p540_p8 = scmp.lt.s32.totalorder %s4112_s21, 3 }
  0x17   : > { %5079 = sst [smem:[#allocation13_spill]] %s5078_s26 }
  0x18   : > { %p541_p9 = pnand %p3111_p7, %p540_p8 }
  0x19   : > { %p595_p10 = scmp.lt.s32.totalorder (!%p541_p9), %s4259_s1, 1  ;;  %vm603_vm0 = vcmask (!%p541_p9), 7168   ;;  %vm606_vm1 = vcmask (!%p541_p9), 3072   ;;  %v4134_v0 = vmov (!%p541_p9), 0   ;;  %v4135_v1 = vmov (!%p541_p9), 0.0   ;;  %s5080_s23 = sld [smem:[#allocation14_spill]] (!%p541_p9) }
  0x1a   : > { %544 = sbr.rel (%p541_p9) target bundleno = 1650 (0x672), region = 96  ;;  %3745 = vset.pattern.permute.xlu1 (!%p541_p9), %v4134_v0  ;;  %3744 = vset.pattern.permute.xlu0 (!%p541_p9), %v4134_v0  ;;  %604 = vst.msk [vmem:[#allocation2] sm:$0xff] (!%p541_p9), %vm603_vm0, %v4135_v1  ;;  %605 = vst.msk [vmem:[#allocation2 + $0x8] sm:$0xff] (!%p541_p9), %vm603_vm0, %v4135_v1  ;;  %vm725_vm2 = vcmask (!%p541_p9), 523264   ;;  %vm728_vm3 = vcmask (!%p541_p9), 521216   ;;  %s5081_s4 = sld [smem:[#allocation18_spill]] (!%p541_p9) }
  0x1b   : > { %1035 = vst [vmem:[#allocation4] sm:$0xff] (!%p541_p9), %v4135_v1  ;;  %1036 = vst [vmem:[#allocation4 + $0x8] sm:$0xff] (!%p541_p9), %v4135_v1  ;;  %s5083_s2 = sld [smem:[#allocation16_spill]] (!%p541_p9)  ;;  %vm732_vm4 = vcmask (!%p541_p9), 517120   ;;  %s5085_s7 = sld [smem:[#allocation21_spill]] (!%p541_p9) }
  0x1c   : > { %1037 = vst [vmem:[#allocation4 + $0x10] sm:$0xff] (!%p541_p9), %v4135_v1  ;;  %1420 = vst [vmem:[#allocation5] sm:$0xff] (!%p541_p9), %v4135_v1  ;;  %s5086_s5 = sld [smem:[#allocation19_spill]] (!%p541_p9)  ;;  %s5087_s6 = sld [smem:[#allocation20_spill]] (!%p541_p9) }
  0x1d   : > { %1421 = vst [vmem:[#allocation5 + $0x8] sm:$0xff] (!%p541_p9), %v4135_v1  ;;  %1422 = vst [vmem:[#allocation5 + $0x10] sm:$0xff] (!%p541_p9), %v4135_v1  ;;  %s4533_s20 = smov (!%p541_p9), 0  }
  0x1e   : > { %1423 = vst [vmem:[#allocation5 + $0x18] sm:$0x3] (!%p541_p9), %v4135_v1  ;;  %607 = vst.msk [vmem:[#allocation2 + $0x10] sm:$0xf] (!%p541_p9), %vm606_vm1, %v4135_v1 }
  0x1f   : > { %727 = vst.msk [vmem:[#allocation3 + $0x8] sm:$0xff] (!%p541_p9), %vm725_vm2, %v4135_v1  ;;  %726 = vst.msk [vmem:[#allocation3] sm:$0xff] (!%p541_p9), %vm725_vm2, %v4135_v1 }
  0x20   : > { %729 = vst.msk [vmem:[#allocation3 + $0x10] sm:$0x3f] (!%p541_p9), %vm728_vm3, %v4135_v1  ;;  %v3746_v13 = vld [vmem:[%s5081_s4] sm:$0xff] (!%p541_p9)   ;;  %v3748_v15 = vld [vmem:[%s5081_s4 + $0x8] sm:$0xff] (!%p541_p9)   ;;  %v3750_v17 = vld [vmem:[%s5081_s4 + $0x10] sm:$0xff] (!%p541_p9)  }
  0x21   : > { %s596_s27 = scalar_select %p595_p10, %s4259_s1, 1  ;;  %v3747_v14 = vld [vmem:[%s5081_s4 + $0x20] sm:$0xff]   ;;  %3495 = vmatprep.subr.bf16.mxu0 %v3746_v13  ;;  %v3749_v16 = vld [vmem:[%s5081_s4 + $0x28] sm:$0xff]   ;;  %v3751_v18 = vld [vmem:[%s5081_s4 + $0x30] sm:$0xff]  }
  0x22   : > { %3483 = vmatprep.subr.bf16.mxu1 %v3747_v14  ;;  %3496 = vmatpush3.bf16.msra.mxu0 %v3746_v13  ;;  %v3752_v19 = vld [vmem:[%s5081_s4 + $0x18] sm:$0xff]   ;;  %v3754_v21 = vld [vmem:[%s5081_s4 + $0x40] sm:$0xff]  }
  0x23   : > { %s3404_s28 = sshll.u32 %s596_s27, 4  ;;  %3484 = vmatpush3.bf16.msra.mxu1 %v3747_v14  ;;  %3497 = vmatprep.subr.bf16.mxu0 %v3748_v15  ;;  %v3753_v20 = vld [vmem:[%s5081_s4 + $0x38] sm:$0xff]   ;;  %v3119_v43 = vld [vmem:[%s5083_s2] ss:$0 sm:$0xff] }
  0x24   : > { %s599_s24 = scalar_lea.vmem %s5080_s23, %s3404_s28  ;;  %3485 = vmatprep.subr.bf16.mxu1 %v3749_v16  ;;  %s5082_s28 = sld [smem:[#allocation15_spill]]  ;;  %v3758_v14 = vld [vmem:[%s5085_s7 + $0x40] sm:$0xff]  }
  0x25   : > { %v601_v2 = vld [vmem:[%s599_s24] sm:$0xff]  ;;  %v602_v3 = vld [vmem:[%s599_s24 + $0x8] sm:$0xff]  ;;  %v672_v12 = vld [vmem:[#allocation2 + $0x12] sm:$0x3]  ;;  %s5084_s23 = sld [smem:[#allocation17_spill]] }
  0x26   : > { %608 = vst.msk [vmem:[#allocation2 + $0x2] sm:$0xff] %vm603_vm0, %v601_v2  ;;  %609 = vst.msk [vmem:[#allocation2 + $0xa] sm:$0xff] %vm603_vm0, %v602_v3  ;;  %3498 = vmatpush3.bf16.msra.mxu0 %v3748_v15  ;;  %v3759_v15 = vld [vmem:[%s5085_s7 + $0x48] sm:$0xff]  }
  0x27   : > { %3486 = vmatpush3.bf16.msra.mxu1 %v3749_v16  ;;  %3499 = vmatprep.subr.bf16.mxu0 %v3750_v17  ;;  %v3760_v16 = vld [vmem:[%s5085_s7 + $0x50] sm:$0xff]  }
  0x28   : > { %3487 = vmatprep.subr.bf16.mxu1 %v3751_v18 }
  0x2a   : > { %3500 = vmatpush3.bf16.msra.mxu0 %v3750_v17  ;;  %v3116_v26 = vld [vmem:[%s5082_s28 + $0x1] ss:$0 sm:$0xff]  ;;  %v3114_v27 = vld [vmem:[%s5082_s28] ss:$0 sm:$0xff]  ;;  %v3118_v34 = vld [vmem:[%s5082_s28 + $0x2] ss:$0 sm:$0xff] }
  0x2b   : > { %3488 = vmatpush3.bf16.msra.mxu1 %v3751_v18  ;;  %3501 = vmatprep.subr.bf16.mxu0 %v3752_v19  ;;  %v3120_v46 = vld [vmem:[%s5084_s23] ss:$0 sm:$0xff]  ;;  %v3761_v17 = vld [vmem:[%s5085_s7 + $0x58] sm:$0xff]   ;;  %s5088_s23 = sand.u32 1, %s4104_s30  }
  0x2c   : > { %3489 = vmatprep.subr.bf16.mxu1 %v3753_v20  ;;  %v3762_v18 = vld [vmem:[%s5085_s7 + $0x60] sm:$0xff]   ;;  %s4523_s24 = scalar_lea.vmem [#allocation7], %s5088_s23 }
  0x2d   : > { %v638_v4 = vld [vmem:[#allocation2 + $0x1] sm:$0xff]  ;;  %v639_v6 = vld [vmem:[#allocation2 + $0x9] sm:$0xff]  ;;  %v640_v8 = vld [vmem:[#allocation2 + $0x11] sm:$0x3] }
  0x2e   : > { %v610_v5 = vld [vmem:[#allocation2] sm:$0xff]  ;;  %645 = vperm.xlu1 %3745, %v638_v4   ;;  %v611_v7 = vld [vmem:[#allocation2 + $0x8] sm:$0xff]  ;;  %v612_v9 = vld [vmem:[#allocation2 + $0x10] sm:$0x3]  ;;  %3502 = vmatpush3.bf16.msra.mxu0 %v3752_v19 }
  0x2f   : > { %616 = vperm.xlu0 %3744, %v610_v5   ;;  %v671_v10 = vld [vmem:[#allocation2 + $0xa] sm:$0xff]  ;;  %v670_v11 = vld [vmem:[#allocation2 + $0x2] sm:$0xff]  ;;  %3490 = vmatpush3.bf16.msra.mxu1 %v3753_v20 }
  0x30   : > { %3507 = vmatprep.subr.bf16.mxu0 %v3754_v21  ;;  %3519 = vmatprep.subr.bf16.mxu1 %v3758_v14  ;;  %v3763_v19 = vld [vmem:[%s5085_s7 + $0x68] sm:$0xff]   ;;  %v3764_v20 = vld [vmem:[%s5085_s7 + $0x70] sm:$0xff]  }
  0x32   : > { %650 = vperm.xlu1 %3745, %v639_v6  }
  0x33   : > { %621 = vperm.xlu0 %3744, %v611_v7  }
  0x36   : > { %655 = vperm.xlu1 %3745, %v640_v8   ;;  %v3755_v8 = vld [vmem:[%s5081_s4 + $0x48] sm:$0xff]  }
  0x37   : > { %626 = vperm.xlu0 %3744, %v612_v9  }
  0x3a   : > { %682 = vperm.xlu1 %3745, %v671_v10   ;;  %v3756_v10 = vld [vmem:[%s5081_s4 + $0x50] sm:$0xff]  }
  0x3b   : > { %677 = vperm.xlu0 %3744, %v670_v11   ;;  %v3757_v11 = vld [vmem:[%s5081_s4 + $0x58] sm:$0xff]  }
  0x3f   : > { %687 = vperm.xlu0 %3744, %v672_v12  }
  0xad   : > { %v646_v22 = vpop.permute.xlu1 %645 }
  0xae   : > { %v617_v23 = vpop.permute.xlu0 %616  ;;  %v664_v28 = vmul.f32 %v3116_v26, %v646_v22  ;;  %v3766_v22 = vld [vmem:[%s5085_s7] sm:$0xff]  }
  0xaf   : > { %v635_v29 = vmul.f32 %v3114_v27, %v617_v23  ;;  %v3782_v23 = vld [vmem:[%s5051_s10 + $0x40] sm:$0xff]  }
  0xb1   : > { %v651_v24 = vpop.permute.xlu1 %650  ;;  %v667_v35 = vadd.f32 %v664_v28, %v635_v29 }
  0xb2   : > { %v622_v25 = vpop.permute.xlu0 %621  ;;  %v665_v30 = vmul.f32 %v3116_v26, %v651_v24  ;;  %v3783_v24 = vld [vmem:[%s5051_s10 + $0x48] sm:$0xff]  }
  0xb3   : > { %v636_v31 = vmul.f32 %v3114_v27, %v622_v25  ;;  %v3784_v25 = vld [vmem:[%s5051_s10 + $0x50] sm:$0xff]  }
  0xb5   : > { %v656_v32 = vpop.permute.xlu1 %655  ;;  %v668_v36 = vadd.f32 %v665_v30, %v636_v31  ;;  %v3155_v31 = vld [vmem:[%s5086_s5] ss:$0 sm:$0xff] }
  0xb6   : > { %v627_v33 = vpop.permute.xlu0 %626  ;;  %v666_v39 = vmul.f32 %v3116_v26, %v656_v32 }
  0xb7   : > { %v637_v40 = vmul.f32 %v3114_v27, %v627_v33 }
  0xb9   : > { %v683_v37 = vpop.permute.xlu1 %682  ;;  %v669_v48 = vadd.f32 %v666_v39, %v637_v40 }
  0xba   : > { %v678_v38 = vpop.permute.xlu0 %677  ;;  %v697_v41 = vmul.f32 %v3118_v34, %v683_v37 }
  0xbb   : > { %v696_v42 = vmul.f32 %v3118_v34, %v678_v38 }
  0xbc   : > { %v700_v44 = vadd.f32 %v697_v41, %v668_v36 }
  0xbd   : > { %v699_v45 = vadd.f32 %v696_v42, %v667_v35 }
  0xbe   : > { %v688_v47 = vpop.permute.xlu0 %687  ;;  %v710_v49 = vmul.f32 %v3119_v43, %v700_v44 }
  0xbf   : > { %v709_v50 = vmul.f32 %v3119_v43, %v699_v45  ;;  %v698_v51 = vmul.f32 %v3118_v34, %v688_v47  ;;  %v3156_v34 = vld [vmem:[%s5087_s6] ss:$0 sm:$0xff] }
  0xc0   : > { %v720_v52 = vadd.f32 %v3120_v46, %v710_v49 }
  0xc1   : > { %v719_v53 = vadd.f32 %v3120_v46, %v709_v50  ;;  %v701_v54 = vadd.f32 %v698_v51, %v669_v48 }
  0xc2   : > { %v723_v55 = vmax.f32 %v720_v52, 0.0 }
  0xc3   : > { %v722_v56 = vmax.f32 %v719_v53, 0.0  ;;  %v711_v57 = vmul.f32 %v3119_v43, %v701_v54 }
  0xc4   : > { %731 = vst.msk [vmem:[#allocation3 + $0xa] sm:$0xff] %vm725_vm2, %v723_v55 }
  0xc5   : > { %730 = vst.msk [vmem:[#allocation3 + $0x2] sm:$0xff] %vm725_vm2, %v722_v56  ;;  %v721_v58 = vadd.f32 %v3120_v46, %v711_v57  ;;  %v3767_v56 = vld [vmem:[%s5085_s7 + $0x8] sm:$0xff]  }
  0xc7   : > { %v724_v59 = vmax.f32 %v721_v58, 0.0  ;;  %v3768_v58 = vld [vmem:[%s5085_s7 + $0x10] sm:$0xff]  }
  0xc9   : > { %733 = vst.msk [vmem:[#allocation3 + $0x12] sm:$0x3] %vm732_vm4, %v724_v59  ;;  %v3769_v59 = vld [vmem:[%s5085_s7 + $0x18] sm:$0xff]  }
  0xcb   : > { %v918_v3 = vld [vmem:[#allocation3 + $0xa] sm:$0xff] }
  0xcc   : > { %v747_v60 = vld [vmem:[#allocation3 + $0x1] sm:$0xff]  ;;  %v748_v61 = vld [vmem:[#allocation3 + $0x9] sm:$0xff] }
  0xcd   : > { %v734_v62 = vld [vmem:[#allocation3] sm:$0xff]  ;;  %v750_v63 = vpack.c.bf16 %v748_v61, %v747_v60  ;;  %v735_v0 = vld [vmem:[#allocation3 + $0x8] sm:$0xff]  ;;  %v3771_v61 = vld [vmem:[%s5085_s7 + $0x28] sm:$0xff]  }
  0xce   : > { %v737_v1 = vpack.c.bf16 %v735_v0, %v734_v62  ;;  %v917_v2 = vld [vmem:[#allocation3 + $0x2] sm:$0xff]  ;;  %v3772_v62 = vld [vmem:[%s5085_s7 + $0x30] sm:$0xff]  }
  0xcf   : > { %3491 = vmatprep.mubr.msk.bf16.mxu1 %vm725_vm2, %v750_v63  ;;  %v920_v9 = vpack.c.bf16 %v918_v3, %v917_v2  ;;  %v3770_v60 = vld [vmem:[%s5085_s7 + $0x20] sm:$0xff]   ;;  %v3773_v63 = vld [vmem:[%s5085_s7 + $0x38] sm:$0xff]   ;;  %v3775_v3 = vld [vmem:[%s5085_s7 + $0x88] sm:$0xff]  }
  0xd0   : > { %3503 = vmatprep.mubr.msk.bf16.mxu0 %vm725_vm2, %v737_v1  ;;  %v749_v4 = vld [vmem:[#allocation3 + $0x11] sm:$0xf]  ;;  %v3774_v0 = vld [vmem:[%s5085_s7 + $0x80] sm:$0xff]  }
  0xd1   : > { %v736_v5 = vld [vmem:[#allocation3 + $0x10] sm:$0xf]  ;;  %v751_v6 = vpack.c.bf16 %v749_v4, %v749_v4  ;;  %v3776_v4 = vld [vmem:[%s5085_s7 + $0x90] sm:$0xff]  }
  0xd2   : > { %v738_v7 = vpack.c.bf16 %v736_v5, %v736_v5  ;;  %v919_v12 = vld [vmem:[#allocation3 + $0x12] sm:$0xf]  ;;  %v3777_v5 = vld [vmem:[%s5085_s7 + $0x98] sm:$0xff]  }
  0xd3   : > { %3492 = vmatmul.mubr.msk.bf16.vlgmr.msra.gmra.mrb[0].mxu1 %vm725_vm2, %v751_v6  ;;  %v921_v13 = vpack.c.bf16 %v919_v12, %v919_v12  ;;  %v3778_v6 = vld [vmem:[%s5085_s7 + $0xa0] sm:$0xff]   ;;  %v3785_v12 = vld [vmem:[%s5051_s10 + $0x58] sm:$0xff]  }
  0xd4   : > { %3504 = vmatmul.mubr.msk.bf16.vlgmr.msra.gmra.mrb[0].mxu0 %vm725_vm2, %v738_v7  ;;  %3520 = vmatpush3.bf16.msra.mxu1 %v3758_v14  ;;  %v3779_v7 = vld [vmem:[%s5085_s7 + $0xa8] sm:$0xff]  }
  0xd5   : > { %3508 = vmatpush3.bf16.msra.mxu0 %v3754_v21  ;;  %3515 = vmatprep.mubr.msk.bf16.mxu0 %vm725_vm2, %v920_v9  ;;  %v3765_v21 = vld [vmem:[%s5085_s7 + $0x78] sm:$0xff]   ;;  %v3787_v14 = vld [vmem:[%s5051_s10 + $0x68] sm:$0xff]  }
  0xd6   : > { %3509 = vmatprep.subr.bf16.mxu0 %v3755_v8  ;;  %3521 = vmatprep.subr.bf16.mxu1 %v3759_v15  ;;  %v3781_v9 = vld [vmem:[%s5085_s7 + $0xb8] sm:$0xff]  }
  0xd8   : > { %3522 = vmatpush3.bf16.msra.mxu1 %v3759_v15  ;;  %v3788_v15 = vld [vmem:[%s5051_s10 + $0x70] sm:$0xff]  }
  0xd9   : > { %3510 = vmatpush3.bf16.msra.mxu0 %v3755_v8  ;;  %3523 = vmatprep.subr.bf16.mxu1 %v3760_v16  ;;  %v3780_v8 = vld [vmem:[%s5085_s7 + $0xb0] sm:$0xff]  }
  0xda   : > { %3511 = vmatprep.subr.bf16.mxu0 %v3756_v10 }
  0xdc   : > { %3524 = vmatpush3.bf16.msra.mxu1 %v3760_v16  ;;  %v3789_v16 = vld [vmem:[%s5051_s10 + $0x78] sm:$0xff]  }
  0xdd   : > { %3512 = vmatpush3.bf16.msra.mxu0 %v3756_v10  ;;  %3525 = vmatprep.subr.bf16.mxu1 %v3761_v17 }
  0xde   : > { %3513 = vmatprep.subr.bf16.mxu0 %v3757_v11 }
  0xe0   : > { %3526 = vmatpush3.bf16.msra.mxu1 %v3761_v17  ;;  %v3790_v17 = vld [vmem:[%s5051_s10] sm:$0xff]  }
  0xe1   : > { %3514 = vmatpush3.bf16.msra.mxu0 %v3757_v11  ;;  %3527 = vmatprep.subr.bf16.mxu1 %v3762_v18 }
  0xe2   : > { %3579 = vmatprep.subr.bf16.mxu0 %v3782_v23 }
  0xe4   : > { %3516 = vmatmul.mubr.msk.bf16.vlgmr.msra.gmra.mrb[0].mxu0 %vm725_vm2, %v921_v13  ;;  %3528 = vmatpush3.bf16.msra.mxu1 %v3762_v18  ;;  %v3786_v13 = vld [vmem:[%s5051_s10 + $0x60] sm:$0xff]  }
  0xe5   : > { %3529 = vmatprep.subr.bf16.mxu1 %v3763_v19  ;;  %3580 = vmatpush3.bf16.msra.mxu0 %v3782_v23  ;;  %v3213_v18 = vld [vmem:[%s5049_s8] ss:$0 sm:$0xff] }
  0xe6   : > { %3581 = vmatprep.subr.bf16.mxu0 %v3783_v24 }
  0xe8   : > { %3530 = vmatpush3.bf16.msra.mxu1 %v3763_v19 }
  0xe9   : > { %3531 = vmatprep.subr.bf16.mxu1 %v3764_v20  ;;  %3582 = vmatpush3.bf16.msra.mxu0 %v3783_v24 }
  0xea   : > { %3583 = vmatprep.subr.bf16.mxu0 %v3784_v25 }
  0xec   : > { %3532 = vmatpush3.bf16.msra.mxu1 %v3764_v20  ;;  %v3214_v20 = vld [vmem:[%s5050_s9] ss:$0 sm:$0xff] }
  0xed   : > { %3533 = vmatprep.subr.bf16.mxu1 %v3765_v21  ;;  %3584 = vmatpush3.bf16.msra.mxu0 %v3784_v25 }
  0xee   : > { %3585 = vmatprep.subr.bf16.mxu0 %v3785_v12 }
  0xf0   : > { %3534 = vmatpush3.bf16.msra.mxu1 %v3765_v21 }
  0xf1   : > { %3539 = vmatprep.subr.bf16.mxu1 %v3766_v22  ;;  %3586 = vmatpush3.bf16.msra.mxu0 %v3785_v12  ;;  %v4525_v12 = vmov 0.0  }
  0xf2   : > { %3587 = vmatprep.subr.bf16.mxu0 %v3786_v13 }
  0xf5   : > { %3588 = vmatpush3.bf16.msra.mxu0 %v3786_v13  ;;  %v4527_v13 = vmov 0.0  }
  0xf6   : > { %3589 = vmatprep.subr.bf16.mxu0 %v3787_v14 }
  0xf9   : > { %3590 = vmatpush3.bf16.msra.mxu0 %v3787_v14  ;;  %v4529_v14 = vmov 0.0  }
  0xfa   : > { %3591 = vmatprep.subr.bf16.mxu0 %v3788_v15 }
  0xfd   : > { %3592 = vmatpush3.bf16.msra.mxu0 %v3788_v15  ;;  %v4531_v15 = vmov 0.0  }
  0xfe   : > { %3593 = vmatprep.subr.bf16.mxu0 %v3789_v16 }
 0x101   : > { %3594 = vmatpush3.bf16.msra.mxu0 %v3789_v16 }
 0x102   : > { %3599 = vmatprep.subr.bf16.mxu0 %v3790_v17 }
 0x1a6   : > { %v3493_v26 = vpop.f32.mrb[0].mxu1 }
 0x1a7   : > { %v825_v27 = vpop.f32.mrb[1].mxu1 }
 0x1a8   : > { %v3494_v28 = vpop.f32.mrb[2].mxu1 }
 0x1a9   : > { %v828_v29 = vpop.f32.mrb[3].mxu1 }
 0x1b7   : > { %v3517_v30 = vpop.f32.mrb[0].mxu0 }
 0x1b8   : > { %v3639_v32 = vadd.f32 %v3517_v30, %v3493_v26  ;;  %v995_v33 = vpop.f32.mrb[1].mxu0 }
 0x1b9   : > { %v3640_v35 = vadd.f32 %v995_v33, %v825_v27  ;;  %v3518_v36 = vpop.f32.mrb[2].mxu0 }
 0x1ba   : > { %v1021_v37 = vmul.f32 %v3639_v32, %v3155_v31  ;;  %v998_v38 = vpop.f32.mrb[3].mxu0 }
 0x1bb   : > { %v1019_v39 = vmul.f32 %v3640_v35, %v3155_v31  ;;  %v3641_v40 = vadd.f32 %v998_v38, %v828_v29 }
 0x1bc   : > { %v1031_v41 = vadd.f32 %v3156_v34, %v1021_v37 }
 0x1bd   : > { %v1029_v42 = vadd.f32 %v3156_v34, %v1019_v39  ;;  %v1020_v43 = vmul.f32 %v3641_v40, %v3155_v31 }
 0x1be   : > { %v1034_v44 = vmax.f32 %v1031_v41, 0.0  ;;  %v3791_v41 = vld [vmem:[%s5051_s10 + $0x8] sm:$0xff]  }
 0x1bf   : > { %v1032_v45 = vmax.f32 %v1029_v42, 0.0  ;;  %v1030_v46 = vadd.f32 %v3156_v34, %v1020_v43  ;;  %v3792_v43 = vld [vmem:[%s5051_s10 + $0x10] sm:$0xff]  }
 0x1c0   : > { %1040 = vst [vmem:[#allocation4 + $0x12] sm:$0xf] %v1034_v44  ;;  %v3793_v44 = vld [vmem:[%s5051_s10 + $0x18] sm:$0xff]  }
 0x1c1   : > { %1038 = vst [vmem:[#allocation4 + $0x2] sm:$0xff] %v1032_v45  ;;  %v1033_v47 = vmax.f32 %v1030_v46, 0.0  ;;  %v3795_v46 = vld [vmem:[%s5051_s10 + $0x28] sm:$0xff]  }
 0x1c3   : > { %1039 = vst [vmem:[#allocation4 + $0xa] sm:$0xff] %v1033_v47  ;;  %v1279_v48 = vpack.c.bf16 %v1033_v47, %v1032_v45  ;;  %v3794_v45 = vld [vmem:[%s5051_s10 + $0x20] sm:$0xff]   ;;  %v3796_v47 = vld [vmem:[%s5051_s10 + $0x30] sm:$0xff]  }
 0x1c7   : > { %v1278_v10 = vld [vmem:[#allocation4 + $0x12] sm:$0x3f] }
 0x1c8   : > { %v1062_v49 = vld [vmem:[#allocation4 + $0x1] sm:$0xff]  ;;  %v1280_v11 = vpack.c.bf16 %v1278_v10, %v1278_v10 }
 0x1c9   : > { %v1041_v55 = vld [vmem:[#allocation4] sm:$0xff] }
 0x1ca   : > { %v1063_v50 = vld [vmem:[#allocation4 + $0x9] sm:$0xff]  ;;  %v1064_v51 = vld [vmem:[#allocation4 + $0x11] sm:$0x3f] }
 0x1cb   : > { %v1042_v52 = vld [vmem:[#allocation4 + $0x8] sm:$0xff]  ;;  %v1065_v53 = vpack.c.bf16 %v1063_v50, %v1062_v49  ;;  %v1066_v54 = vpack.c.bf16 %v1064_v51, %v1064_v51  ;;  %v1043_v1 = vld [vmem:[#allocation4 + $0x10] sm:$0x3f] }
 0x1cc   : > { %v1044_v57 = vpack.c.bf16 %v1042_v52, %v1041_v55  ;;  %v1045_v2 = vpack.c.bf16 %v1043_v1, %v1043_v1  ;;  %v3798_v49 = vld [vmem:[%s5051_s10 + $0x80] sm:$0xff]   ;;  %v3799_v52 = vld [vmem:[%s5051_s10 + $0x88] sm:$0xff]  }
 0x1cd   : > { %3535 = vmatprep.mubr.bf16.mxu1 %v1065_v53  ;;  %v3800_v53 = vld [vmem:[%s5051_s10 + $0x90] sm:$0xff]   ;;  %v3802_v55 = vld [vmem:[%s5051_s10 + $0xa0] sm:$0xff]  }
 0x1ce   : > { %3536 = vmatmul.mubr.bf16.vlgmr.msra.gmra.mrb[4].mxu1 %v1066_v54  ;;  %v3801_v54 = vld [vmem:[%s5051_s10 + $0x98] sm:$0xff]  }
 0x1cf   : > { %3540 = vmatpush3.bf16.msra.mxu1 %v3766_v22  ;;  %3555 = vmatprep.mubr.bf16.mxu1 %v1044_v57  ;;  %v3804_v57 = vld [vmem:[%s5051_s10 + $0xb0] sm:$0xff]  }
 0x1d0   : > { %3541 = vmatprep.subr.bf16.mxu1 %v3767_v56 }
 0x1d3   : > { %3542 = vmatpush3.bf16.msra.mxu1 %v3767_v56  ;;  %v3803_v56 = vld [vmem:[%s5051_s10 + $0xa8] sm:$0xff]  }
 0x1d4   : > { %3543 = vmatprep.subr.bf16.mxu1 %v3768_v58 }
 0x1d7   : > { %3544 = vmatpush3.bf16.msra.mxu1 %v3768_v58  ;;  %v3805_v58 = vld [vmem:[%s5051_s10 + $0xb8] sm:$0xff]  }
 0x1d8   : > { %3545 = vmatprep.subr.bf16.mxu1 %v3769_v59 }
 0x1db   : > { %3546 = vmatpush3.bf16.msra.mxu1 %v3769_v59 }
 0x1dc   : > { %3547 = vmatprep.subr.bf16.mxu1 %v3770_v60 }
 0x1df   : > { %3548 = vmatpush3.bf16.msra.mxu1 %v3770_v60 }
 0x1e0   : > { %3549 = vmatprep.subr.bf16.mxu1 %v3771_v61 }
 0x1e3   : > { %3550 = vmatpush3.bf16.msra.mxu1 %v3771_v61  ;;  %v3271_v61 = vld [vmem:[%s5052_s11] ss:$0 sm:$0xff] }
 0x1e4   : > { %3551 = vmatprep.subr.bf16.mxu1 %v3772_v62 }
 0x1e7   : > { %3552 = vmatpush3.bf16.msra.mxu1 %v3772_v62 }
 0x1e8   : > { %3553 = vmatprep.subr.bf16.mxu1 %v3773_v63 }
 0x1eb   : > { %3554 = vmatpush3.bf16.msra.mxu1 %v3773_v63  ;;  %v3272_v63 = vld [vmem:[%s5053_s12] ss:$0 sm:$0xff] }
 0x1ec   : > { %3559 = vmatprep.subr.bf16.mxu1 %v3774_v0 }
 0x1ee   : > { %3556 = vmatmul.mubr.bf16.vlgmr.msra.gmra.mrb[4].mxu1 %v1045_v2 }
 0x1ef   : > { %3560 = vmatpush3.bf16.msra.mxu1 %v3774_v0  ;;  %3575 = vmatprep.mubr.bf16.mxu1 %v1279_v48  ;;  %v3797_v48 = vld [vmem:[%s5051_s10 + $0x38] sm:$0xff]  }
 0x1f0   : > { %3561 = vmatprep.subr.bf16.mxu1 %v3775_v3 }
 0x1f3   : > { %3562 = vmatpush3.bf16.msra.mxu1 %v3775_v3 }
 0x1f4   : > { %3563 = vmatprep.subr.bf16.mxu1 %v3776_v4 }
 0x1f7   : > { %3564 = vmatpush3.bf16.msra.mxu1 %v3776_v4 }
 0x1f8   : > { %3565 = vmatprep.subr.bf16.mxu1 %v3777_v5 }
 0x1fb   : > { %3566 = vmatpush3.bf16.msra.mxu1 %v3777_v5 }
 0x1fc   : > { %3567 = vmatprep.subr.bf16.mxu1 %v3778_v6 }
 0x1ff   : > { %3568 = vmatpush3.bf16.msra.mxu1 %v3778_v6 }
 0x200   : > { %3569 = vmatprep.subr.bf16.mxu1 %v3779_v7 }
 0x203   : > { %3570 = vmatpush3.bf16.msra.mxu1 %v3779_v7 }
 0x204   : > { %3571 = vmatprep.subr.bf16.mxu1 %v3780_v8 }
 0x207   : > { %3572 = vmatpush3.bf16.msra.mxu1 %v3780_v8 }
 0x208   : > { %3573 = vmatprep.subr.bf16.mxu1 %v3781_v9 }
 0x20b   : > { %3574 = vmatpush3.bf16.msra.mxu1 %v3781_v9 }
 0x20e   : > { %3576 = vmatmul.mubr.bf16.vlgmr.msra.gmra.mrb[4].mxu1 %v1280_v11 }
 0x2e1   : > { %v3577_v19 = vpop.f32.mrb[4].mxu1 }
 0x2e2   : > { %v1406_v21 = vmul.f32 %v3577_v19, %v3213_v18  ;;  %v1380_v22 = vpop.f32.mrb[5].mxu1 }
 0x2e3   : > { %v1404_v23 = vmul.f32 %v3213_v18, %v1380_v22  ;;  %v3578_v24 = vpop.f32.mrb[6].mxu1 }
 0x2e4   : > { %v1416_v25 = vadd.f32 %v3214_v20, %v1406_v21  ;;  %v1383_v26 = vpop.f32.mrb[7].mxu1 }
 0x2e5   : > { %v1414_v27 = vadd.f32 %v3214_v20, %v1404_v23  ;;  %v1405_v28 = vmul.f32 %v3213_v18, %v1383_v26 }
 0x2e6   : > { %v1419_v29 = vmax.f32 %v1416_v25, 0.0 }
 0x2e7   : > { %v1417_v30 = vmax.f32 %v1414_v27, 0.0  ;;  %v1415_v31 = vadd.f32 %v3214_v20, %v1405_v28 }
 0x2e8   : > { %1426 = vst [vmem:[#allocation5 + $0x12] sm:$0x3f] %v1419_v29 }
 0x2e9   : > { %1424 = vst [vmem:[#allocation5 + $0x2] sm:$0xff] %v1417_v30  ;;  %v1418_v32 = vmax.f32 %v1415_v31, 0.0 }
 0x2eb   : > { %1425 = vst [vmem:[#allocation5 + $0xa] sm:$0xff] %v1418_v32  ;;  %v1665_v33 = vpack.c.bf16 %v1418_v32, %v1417_v30 }
 0x2ef   : > { %v1664_v59 = vld [vmem:[#allocation5 + $0x12] sm:$0xff] }
 0x2f0   : > { %v1448_v34 = vld [vmem:[#allocation5 + $0x1] sm:$0xff]  ;;  %v1666_v60 = vpack.c.bf16 %v1664_v59, %v1664_v59 }
 0x2f1   : > { %v1427_v40 = vld [vmem:[#allocation5] sm:$0xff] }
 0x2f2   : > { %v1449_v35 = vld [vmem:[#allocation5 + $0x9] sm:$0xff]  ;;  %v1450_v36 = vld [vmem:[#allocation5 + $0x11] sm:$0xff] }
 0x2f3   : > { %v1428_v37 = vld [vmem:[#allocation5 + $0x8] sm:$0xff]  ;;  %v1451_v38 = vpack.c.bf16 %v1449_v35, %v1448_v34  ;;  %v1452_v39 = vpack.c.bf16 %v1450_v36, %v1450_v36  ;;  %v1429_v50 = vld [vmem:[#allocation5 + $0x10] sm:$0xff] }
 0x2f4   : > { %v1430_v42 = vpack.c.bf16 %v1428_v37, %v1427_v40  ;;  %v1431_v51 = vpack.c.bf16 %v1429_v50, %v1429_v50 }
 0x2f5   : > { %3595 = vmatprep.mubr.bf16.mxu0 %v1451_v38 }
 0x2f6   : > { %3596 = vmatmul.mubr.bf16.vlgmr.msra.gmra.mrb[4].mxu0 %v1452_v39 }
 0x2f7   : > { %3600 = vmatpush3.bf16.msra.mxu0 %v3790_v17  ;;  %3615 = vmatprep.mubr.bf16.mxu0 %v1430_v42 }
 0x2f8   : > { %3601 = vmatprep.subr.bf16.mxu0 %v3791_v41 }
 0x2fb   : > { %3602 = vmatpush3.bf16.msra.mxu0 %v3791_v41 }
 0x2fc   : > { %3603 = vmatprep.subr.bf16.mxu0 %v3792_v43 }
 0x2ff   : > { %3604 = vmatpush3.bf16.msra.mxu0 %v3792_v43 }
 0x300   : > { %3605 = vmatprep.subr.bf16.mxu0 %v3793_v44 }
 0x303   : > { %3606 = vmatpush3.bf16.msra.mxu0 %v3793_v44 }
 0x304   : > { %3607 = vmatprep.subr.bf16.mxu0 %v3794_v45 }
 0x307   : > { %3608 = vmatpush3.bf16.msra.mxu0 %v3794_v45 }
 0x308   : > { %3609 = vmatprep.subr.bf16.mxu0 %v3795_v46 }
 0x30b   : > { %3610 = vmatpush3.bf16.msra.mxu0 %v3795_v46 }
 0x30c   : > { %3611 = vmatprep.subr.bf16.mxu0 %v3796_v47 }
 0x30f   : > { %3612 = vmatpush3.bf16.msra.mxu0 %v3796_v47 }
 0x310   : > { %3613 = vmatprep.subr.bf16.mxu0 %v3797_v48 }
 0x313   : > { %3614 = vmatpush3.bf16.msra.mxu0 %v3797_v48 }
 0x314   : > { %3619 = vmatprep.subr.bf16.mxu0 %v3798_v49 }
 0x316   : > { %3616 = vmatmul.mubr.bf16.vlgmr.msra.gmra.mrb[4].mxu0 %v1431_v51 }
 0x317   : > { %3620 = vmatpush3.bf16.msra.mxu0 %v3798_v49  ;;  %3635 = vmatprep.mubr.bf16.mxu0 %v1665_v33 }
 0x318   : > { %3621 = vmatprep.subr.bf16.mxu0 %v3799_v52 }
 0x31b   : > { %3622 = vmatpush3.bf16.msra.mxu0 %v3799_v52 }
 0x31c   : > { %3623 = vmatprep.subr.bf16.mxu0 %v3800_v53 }
 0x31f   : > { %3624 = vmatpush3.bf16.msra.mxu0 %v3800_v53 }
 0x320   : > { %3625 = vmatprep.subr.bf16.mxu0 %v3801_v54 }
 0x323   : > { %3626 = vmatpush3.bf16.msra.mxu0 %v3801_v54 }
 0x324   : > { %3627 = vmatprep.subr.bf16.mxu0 %v3802_v55 }
 0x327   : > { %3628 = vmatpush3.bf16.msra.mxu0 %v3802_v55 }
 0x328   : > { %3629 = vmatprep.subr.bf16.mxu0 %v3803_v56 }
 0x32b   : > { %3630 = vmatpush3.bf16.msra.mxu0 %v3803_v56 }
 0x32c   : > { %3631 = vmatprep.subr.bf16.mxu0 %v3804_v57 }
 0x32f   : > { %3632 = vmatpush3.bf16.msra.mxu0 %v3804_v57 }
 0x330   : > { %3633 = vmatprep.subr.bf16.mxu0 %v3805_v58 }
 0x333   : > { %3634 = vmatpush3.bf16.msra.mxu0 %v3805_v58 }
 0x336   : > { %3636 = vmatmul.mubr.bf16.vlgmr.msra.gmra.mrb[4].mxu0 %v1666_v60 }
 0x409   : > { %v3637_v62 = vpop.f32.mrb[4].mxu0 }
 0x40a   : > { %v1792_v0 = vmul.f32 %v3637_v62, %v3271_v61  ;;  %v1766_v1 = vpop.f32.mrb[5].mxu0 }
 0x40b   : > { %v1790_v2 = vmul.f32 %v3271_v61, %v1766_v1  ;;  %v3638_v3 = vpop.f32.mrb[6].mxu0 }
 0x40c   : > { %v1802_v4 = vadd.f32 %v3272_v63, %v1792_v0  ;;  %v1769_v5 = vpop.f32.mrb[7].mxu0 }
 0x40d   : > { %v1800_v6 = vadd.f32 %v3272_v63, %v1790_v2  ;;  %v1791_v7 = vmul.f32 %v3271_v61, %v1769_v5 }
 0x40e   : > { %v1805_v8 = vmax.f32 %v1802_v4, 0.0 }
 0x40f   : > { %v1803_v9 = vmax.f32 %v1800_v6, 0.0  ;;  %v1801_v10 = vadd.f32 %v3272_v63, %v1791_v7 }
 0x410   : > { %1808 = vst [vmem:[#allocation6 + $0x10] sm:$0xff] %v1805_v8 }
 0x411   : > { %1806 = vst [vmem:[#allocation6] sm:$0xff] %v1803_v9  ;;  %v1804_v11 = vmax.f32 %v1801_v10, 0.0 }
 0x413   : > { %1807 = vst [vmem:[#allocation6 + $0x8] sm:$0xff] %v1804_v11 }
 0x414 LB: >> { %v3806_v16 = vld [vmem:[%s5055_s14 + $0x4] ss:$16 sps:$4 sm:$0xff]   ;;  %v3808_v17 = vld [vmem:[%s5055_s14 + $0xc] ss:$16 sps:$4 sm:$0xff]   ;;  %v4136_v18 = vmov 0   ;;  %v1854_v51 = vpack.c.bf16 %v4128_v15, %v4128_v15  ;;  %s1819_s25 = scalar_lea.vmem [#allocation6], %s4132_s20  ;;  %s4132_s20 = sphi %s4533_s20, %s1814_s20   ;;  %v4128_v15 = vphi %v4531_v15, %v4968_v15   ;;  %v4124_v14 = vphi %v4529_v14, %v4965_v14   ;;  %v4120_v13 = vphi %v4527_v13, %v5089_v13   ;;  %v4116_v12 = vphi %v4525_v12, %v3018_v12  }
 0x415   : >> { %2079 = vmatprep.mubr.bf16.mxu0 %v4136_v18  ;;  %2120 = vmatprep.mubr.bf16.mxu1 %v4136_v18  ;;  %v3810_v19 = vld [vmem:[%s5055_s14] ss:$16 sps:$4 sm:$0xff]   ;;  %v3811_v20 = vld [vmem:[%s5055_s14 + $0x8] ss:$16 sps:$4 sm:$0xff]   ;;  %v3812_v21 = vld [vmem:[%s5055_s14 + $0x24] ss:$16 sps:$4 sm:$0xff]  }
 0x416   : >> { %2047 = vmatprep.subr.bf16.mxu0 %v3806_v16  ;;  %2088 = vmatprep.subr.bf16.mxu1 %v3808_v17  ;;  %v3814_v22 = vld [vmem:[%s5055_s14 + $0x2c] ss:$16 sps:$4 sm:$0xff]   ;;  %v3816_v23 = vld [vmem:[%s5055_s14 + $0x20] ss:$16 sps:$4 sm:$0xff]   ;;  %v3817_v24 = vld [vmem:[%s5055_s14 + $0x28] ss:$16 sps:$4 sm:$0xff]  }
 0x417   : >> { %2048 = vmatpush1.bf16.msra.mxu0 %v3810_v19  ;;  %2089 = vmatpush1.bf16.msra.mxu1 %v3811_v20  ;;  %v3818_v25 = vld [vmem:[%s5055_s14 + $0x44] ss:$16 sps:$4 sm:$0xff]   ;;  %v3820_v26 = vld [vmem:[%s5055_s14 + $0x4c] ss:$16 sps:$4 sm:$0xff]   ;;  %v3822_v27 = vld [vmem:[%s5055_s14 + $0x40] ss:$16 sps:$4 sm:$0xff]  }
 0x418   : >> { %2049 = vmatprep.subr.bf16.mxu0 %v3812_v21  ;;  %2090 = vmatprep.subr.bf16.mxu1 %v3814_v22  ;;  %v3823_v28 = vld [vmem:[%s5055_s14 + $0x48] ss:$16 sps:$4 sm:$0xff]   ;;  %v3824_v29 = vld [vmem:[%s5055_s14 + $0x64] ss:$16 sps:$4 sm:$0xff]   ;;  %v3826_v30 = vld [vmem:[%s5055_s14 + $0x6c] ss:$16 sps:$4 sm:$0xff]  }
 0x419   : >> { %v3828_v31 = vld [vmem:[%s5055_s14 + $0x60] ss:$16 sps:$4 sm:$0xff]   ;;  %v3829_v32 = vld [vmem:[%s5055_s14 + $0x68] ss:$16 sps:$4 sm:$0xff]   ;;  %v3830_v33 = vld [vmem:[%s5055_s14 + $0x84] ss:$16 sps:$4 sm:$0xff]  }
 0x41a   : >> { %v3832_v34 = vld [vmem:[%s5055_s14 + $0x8c] ss:$16 sps:$4 sm:$0xff]   ;;  %v3834_v35 = vld [vmem:[%s5055_s14 + $0x80] ss:$16 sps:$4 sm:$0xff]   ;;  %v3835_v36 = vld [vmem:[%s5055_s14 + $0x88] ss:$16 sps:$4 sm:$0xff]  }
 0x41b   : >> { %2050 = vmatpush1.bf16.msra.mxu0 %v3816_v23  ;;  %2091 = vmatpush1.bf16.msra.mxu1 %v3817_v24  ;;  %v3836_v37 = vld [vmem:[%s5055_s14 + $0xa4] ss:$16 sps:$4 sm:$0xff]   ;;  %v3838_v38 = vld [vmem:[%s5055_s14 + $0xac] ss:$16 sps:$4 sm:$0xff]   ;;  %v3840_v39 = vld [vmem:[%s5055_s14 + $0xa0] ss:$16 sps:$4 sm:$0xff]  }
 0x41c   : >> { %2051 = vmatprep.subr.bf16.mxu0 %v3818_v25  ;;  %2092 = vmatprep.subr.bf16.mxu1 %v3820_v26  ;;  %v3841_v40 = vld [vmem:[%s5055_s14 + $0xa8] ss:$16 sps:$4 sm:$0xff]   ;;  %v3842_v41 = vld [vmem:[%s5055_s14 + $0xc4] ss:$16 sps:$4 sm:$0xff]   ;;  %v3844_v42 = vld [vmem:[%s5055_s14 + $0xcc] ss:$16 sps:$4 sm:$0xff]  }
 0x41d   : >> { %v3846_v43 = vld [vmem:[%s5055_s14 + $0xc0] ss:$16 sps:$4 sm:$0xff]   ;;  %v3847_v44 = vld [vmem:[%s5055_s14 + $0xc8] ss:$16 sps:$4 sm:$0xff]   ;;  %v3848_v45 = vld [vmem:[%s5055_s14 + $0xe4] ss:$16 sps:$4 sm:$0xff]  }
 0x41e   : >> { %v3850_v46 = vld [vmem:[%s5055_s14 + $0xec] ss:$16 sps:$4 sm:$0xff]   ;;  %v3852_v47 = vld [vmem:[%s5055_s14 + $0xe0] ss:$16 sps:$4 sm:$0xff]   ;;  %v3853_v48 = vld [vmem:[%s5055_s14 + $0xe8] ss:$16 sps:$4 sm:$0xff]  }
 0x41f   : >> { %2052 = vmatpush1.bf16.msra.mxu0 %v3822_v27  ;;  %2093 = vmatpush1.bf16.msra.mxu1 %v3823_v28  ;;  %v3856_v49 = vld [vmem:[%s5054_s13 + $0x4] ss:$16 sps:$4 sm:$0xff]   ;;  %v3859_v50 = vld [vmem:[%s5054_s13 + $0xc] ss:$16 sps:$4 sm:$0xff]   ;;  %v3854_v52 = vld [vmem:[%s5054_s13] ss:$16 sps:$4 sm:$0xff]  }
 0x420   : >> { %2053 = vmatprep.subr.bf16.mxu0 %v3824_v29  ;;  %2094 = vmatprep.subr.bf16.mxu1 %v3826_v30  ;;  %v3857_v53 = vld [vmem:[%s5054_s13 + $0x8] ss:$16 sps:$4 sm:$0xff]   ;;  %v3862_v54 = vld [vmem:[%s5054_s13 + $0x24] ss:$16 sps:$4 sm:$0xff]   ;;  %v3865_v55 = vld [vmem:[%s5054_s13 + $0x2c] ss:$16 sps:$4 sm:$0xff]  }
 0x421   : >> { %v3860_v56 = vld [vmem:[%s5054_s13 + $0x20] ss:$16 sps:$4 sm:$0xff]   ;;  %v3863_v57 = vld [vmem:[%s5054_s13 + $0x28] ss:$16 sps:$4 sm:$0xff]   ;;  %v3868_v58 = vld [vmem:[%s5054_s13 + $0x44] ss:$16 sps:$4 sm:$0xff]  }
 0x422   : >> { %v3871_v59 = vld [vmem:[%s5054_s13 + $0x4c] ss:$16 sps:$4 sm:$0xff]   ;;  %v3866_v60 = vld [vmem:[%s5054_s13 + $0x40] ss:$16 sps:$4 sm:$0xff]   ;;  %v3869_v61 = vld [vmem:[%s5054_s13 + $0x48] ss:$16 sps:$4 sm:$0xff]  }
 0x423   : >> { %2054 = vmatpush1.bf16.msra.mxu0 %v3828_v31  ;;  %2095 = vmatpush1.bf16.msra.mxu1 %v3829_v32  ;;  %v3874_v62 = vld [vmem:[%s5054_s13 + $0x64] ss:$16 sps:$4 sm:$0xff]   ;;  %v3877_v63 = vld [vmem:[%s5054_s13 + $0x6c] ss:$16 sps:$4 sm:$0xff]   ;;  %v3872_v0 = vld [vmem:[%s5054_s13 + $0x60] ss:$16 sps:$4 sm:$0xff]  }
 0x424   : >> { %2055 = vmatprep.subr.bf16.mxu0 %v3830_v33  ;;  %2096 = vmatprep.subr.bf16.mxu1 %v3832_v34  ;;  %v3875_v1 = vld [vmem:[%s5054_s13 + $0x68] ss:$16 sps:$4 sm:$0xff]   ;;  %v3880_v2 = vld [vmem:[%s5054_s13 + $0x84] ss:$16 sps:$4 sm:$0xff]   ;;  %v3883_v3 = vld [vmem:[%s5054_s13 + $0x8c] ss:$16 sps:$4 sm:$0xff]  }
 0x425   : >> { %v3878_v4 = vld [vmem:[%s5054_s13 + $0x80] ss:$16 sps:$4 sm:$0xff]   ;;  %v3881_v5 = vld [vmem:[%s5054_s13 + $0x88] ss:$16 sps:$4 sm:$0xff]   ;;  %v3886_v6 = vld [vmem:[%s5054_s13 + $0xa4] ss:$16 sps:$4 sm:$0xff]  }
 0x426   : >> { %v3889_v7 = vld [vmem:[%s5054_s13 + $0xac] ss:$16 sps:$4 sm:$0xff]   ;;  %v3884_v8 = vld [vmem:[%s5054_s13 + $0xa0] ss:$16 sps:$4 sm:$0xff]   ;;  %v3887_v9 = vld [vmem:[%s5054_s13 + $0xa8] ss:$16 sps:$4 sm:$0xff]  }
 0x427   : >> { %2056 = vmatpush1.bf16.msra.mxu0 %v3834_v35  ;;  %2097 = vmatpush1.bf16.msra.mxu1 %v3835_v36  ;;  %v3892_v10 = vld [vmem:[%s5054_s13 + $0xc4] ss:$16 sps:$4 sm:$0xff]   ;;  %v3895_v11 = vld [vmem:[%s5054_s13 + $0xcc] ss:$16 sps:$4 sm:$0xff]   ;;  %v3890_v15 = vld [vmem:[%s5054_s13 + $0xc0] ss:$16 sps:$4 sm:$0xff]  }
 0x428   : >> { %2057 = vmatprep.subr.bf16.mxu0 %v3836_v37  ;;  %2098 = vmatprep.subr.bf16.mxu1 %v3838_v38  ;;  %v3893_v16 = vld [vmem:[%s5054_s13 + $0xc8] ss:$16 sps:$4 sm:$0xff]   ;;  %v3898_v17 = vld [vmem:[%s5054_s13 + $0xe4] ss:$16 sps:$4 sm:$0xff]   ;;  %v3901_v19 = vld [vmem:[%s5054_s13 + $0xec] ss:$16 sps:$4 sm:$0xff]  }
 0x429   : >> { %v3896_v20 = vld [vmem:[%s5054_s13 + $0xe0] ss:$16 sps:$4 sm:$0xff]   ;;  %v3899_v21 = vld [vmem:[%s5054_s13 + $0xe8] ss:$16 sps:$4 sm:$0xff]   ;;  %v3904_v25 = vld [vmem:[%s5058_s17 + $0x4] ss:$16 sps:$4 sm:$0xff]  }
 0x42a   : >> { %v1820_v22 = vld [vmem:[%s1819_s25] sm:$0x1]  ;;  %v3905_v26 = vld [vmem:[%s5058_s17 + $0x8] ss:$16 sps:$4 sm:$0xff]   ;;  %v3907_v27 = vld [vmem:[%s5058_s17 + $0xc] ss:$16 sps:$4 sm:$0xff]  }
 0x42b   : >> { %2058 = vmatpush1.bf16.msra.mxu0 %v3840_v39  ;;  %2099 = vmatpush1.bf16.msra.mxu1 %v3841_v40  ;;  %v1821_v23 = vpack.c.bf16 %v1820_v22, %v1820_v22  ;;  %v3902_v24 = vld [vmem:[%s5058_s17] ss:$16 sps:$4 sm:$0xff]   ;;  %v3910_v28 = vld [vmem:[%s5058_s17 + $0x24] ss:$16 sps:$4 sm:$0xff]   ;;  %v3913_v29 = vld [vmem:[%s5058_s17 + $0x2c] ss:$16 sps:$4 sm:$0xff]  }
 0x42c   : >> { %2059 = vmatprep.subr.bf16.mxu0 %v3842_v41  ;;  %2100 = vmatprep.subr.bf16.mxu1 %v3844_v42  ;;  %v3908_v30 = vld [vmem:[%s5058_s17 + $0x20] ss:$16 sps:$4 sm:$0xff]   ;;  %v3911_v31 = vld [vmem:[%s5058_s17 + $0x28] ss:$16 sps:$4 sm:$0xff]   ;;  %v3916_v32 = vld [vmem:[%s5058_s17 + $0x44] ss:$16 sps:$4 sm:$0xff]  }
 0x42d   : >> { %v3919_v33 = vld [vmem:[%s5058_s17 + $0x4c] ss:$16 sps:$4 sm:$0xff]   ;;  %v3914_v34 = vld [vmem:[%s5058_s17 + $0x40] ss:$16 sps:$4 sm:$0xff]   ;;  %v3917_v35 = vld [vmem:[%s5058_s17 + $0x48] ss:$16 sps:$4 sm:$0xff]  }
 0x42e   : >> { %v3922_v36 = vld [vmem:[%s5058_s17 + $0x64] ss:$16 sps:$4 sm:$0xff]   ;;  %v3920_v37 = vld [vmem:[%s5058_s17 + $0x60] ss:$16 sps:$4 sm:$0xff]   ;;  %v3925_v38 = vld [vmem:[%s5058_s17 + $0x6c] ss:$16 sps:$4 sm:$0xff]  }
 0x42f   : >> { %2060 = vmatpush1.bf16.msra.mxu0 %v3846_v43  ;;  %2101 = vmatpush1.bf16.msra.mxu1 %v3847_v44  ;;  %v3923_v39 = vld [vmem:[%s5058_s17 + $0x68] ss:$16 sps:$4 sm:$0xff]   ;;  %v3928_v40 = vld [vmem:[%s5058_s17 + $0x84] ss:$16 sps:$4 sm:$0xff]   ;;  %v3926_v41 = vld [vmem:[%s5058_s17 + $0x80] ss:$16 sps:$4 sm:$0xff]  }
 0x430   : >> { %2061 = vmatprep.subr.bf16.mxu0 %v3848_v45  ;;  %2102 = vmatprep.subr.bf16.mxu1 %v3850_v46  ;;  %v3931_v42 = vld [vmem:[%s5058_s17 + $0x8c] ss:$16 sps:$4 sm:$0xff]   ;;  %v3929_v43 = vld [vmem:[%s5058_s17 + $0x88] ss:$16 sps:$4 sm:$0xff]   ;;  %v3934_v44 = vld [vmem:[%s5058_s17 + $0xa4] ss:$16 sps:$4 sm:$0xff]  }
 0x431   : >> { %v3932_v45 = vld [vmem:[%s5058_s17 + $0xa0] ss:$16 sps:$4 sm:$0xff]   ;;  %v3937_v46 = vld [vmem:[%s5058_s17 + $0xac] ss:$16 sps:$4 sm:$0xff]   ;;  %v3989_v22 = vld [vmem:[%s5057_s16 + $0xc8] ss:$16 sps:$4 sm:$0xff]  }
 0x432   : >> { %s1814_s20 = sadd.s32 1, %s4132_s20  }
 0x433   : >> { %2062 = vmatpush1.bf16.msra.mxu0 %v3852_v47  ;;  %2103 = vmatpush1.bf16.msra.mxu1 %v3853_v48  ;;  %v3935_v47 = vld [vmem:[%s5058_s17 + $0xa8] ss:$16 sps:$4 sm:$0xff]   ;;  %v3940_v48 = vld [vmem:[%s5058_s17 + $0xc4] ss:$16 sps:$4 sm:$0xff]   ;;  %p1811_p11 = scmp.ge.s32.totalorder %s1814_s20, 24  }
 0x434   : >> { %2289 = vmatprep.subr.bf16.mxu0 %v3856_v49  ;;  %2330 = vmatprep.subr.bf16.mxu1 %v3859_v50  ;;  %v3938_v49 = vld [vmem:[%s5058_s17 + $0xc0] ss:$16 sps:$4 sm:$0xff]   ;;  %v3943_v50 = vld [vmem:[%s5058_s17 + $0xcc] ss:$16 sps:$4 sm:$0xff]   ;;  %s3401_s27 = sshll.u32 (%p1811_p11), %s4259_s1, 4  ;;  %s3035_s6 = sshll.u32 (%p1811_p11), %s4523_s24, 4  ;;  %s3036_s6 = int_to_ptr.vmem [resolvable:$true] %s3035_s6 }
 0x435   : > { %s5002_s5 = scalar_lea.hbm (%p1811_p11), %s5060_s19, %s3401_s27  ;;  %s5090_s22 = sand.u32 (%p1811_p11), 1, %s4104_s30  }
 0x436   : >> { %2080 = vmatmul.mubr.bf16.vlgmr.msra.gmra.mrb[0].mxu0 %v1854_v51  ;;  %2121 = vmatmul.mubr.bf16.vlgmr.msra.gmra.mrb[0].mxu1 %v1854_v51  ;;  %v3941_v51 = vld [vmem:[%s5058_s17 + $0xc8] ss:$16 sps:$4 sm:$0xff]   ;;  %s3023_s29 = scalar_lea.sflag (%p1811_p11), [#allocation8], %s5090_s22  ;;  %s4030_s4 = scalar_lea.vmem (%p1811_p11), %s3036_s6, 16 }
 0x437   : >> { %2290 = vmatpush1.bf16.msra.mxu0 %v3854_v52  ;;  %2331 = vmatpush1.bf16.msra.mxu1 %v3857_v53  ;;  %v3946_v52 = vld [vmem:[%s5058_s17 + $0xe4] ss:$16 sps:$4 sm:$0xff]   ;;  %v3944_v53 = vld [vmem:[%s5058_s17 + $0xe0] ss:$16 sps:$4 sm:$0xff]   ;;  %p4031_p12 = scmp.ne.s32.totalorder (%p1811_p11), %s3036_s6, %s4030_s4  ;;  %s4137_s20 = smov (%p1811_p11), [#allocation7]  }
 0x438   : >> { %2291 = vmatprep.subr.bf16.mxu0 %v3862_v54  ;;  %2332 = vmatprep.subr.bf16.mxu1 %v3865_v55  ;;  %v3949_v54 = vld [vmem:[%s5058_s17 + $0xec] ss:$16 sps:$4 sm:$0xff]   ;;  %v3947_v55 = vld [vmem:[%s5058_s17 + $0xe8] ss:$16 sps:$4 sm:$0xff]   ;;  %s4034_s7 = sshll.u32 (%p1811_p11), %s4137_s20, 4  ;;  %s4035_s7 = int_to_ptr.vmem [resolvable:$false] %s4034_s7 }
 0x439   : >> { %2321 = vmatprep.mubr.bf16.mxu0 %v4136_v18  ;;  %2362 = vmatprep.mubr.bf16.mxu1 %v4136_v18  ;;  %p4032_p13 = pnand (%p1811_p11), %p4031_p12, %p4276_p5  ;;  %s4036_s23 = scalar_lea.vmem (%p1811_p11), %s4035_s7, 32 }
 0x43a   : > { %p4037_p1 = scmp.lt.s32.totalorder (%p1811_p11), %s3036_s6, %s4035_s7  ;;  %p4038_p2 = scmp.lt.s32.totalorder (%p1811_p11), %s4036_s23, %s4030_s4 }
 0x43b   : >> { %2292 = vmatpush1.bf16.msra.mxu0 %v3860_v56  ;;  %2333 = vmatpush1.bf16.msra.mxu1 %v3863_v57  ;;  %v2454_v56 = vpack.c.bf16 %v4120_v13, %v4120_v13  ;;  %v3952_v57 = vld [vmem:[%s5057_s16 + $0x4] ss:$16 sps:$4 sm:$0xff]   ;;  %p4033_p0 = pneg (%p1811_p11), %p4032_p13 }
 0x43c   : >> { %2293 = vmatprep.subr.bf16.mxu0 %v3868_v58  ;;  %2334 = vmatprep.subr.bf16.mxu1 %v3871_v59  ;;  %v3955_v58 = vld [vmem:[%s5057_s16 + $0xc] ss:$16 sps:$4 sm:$0xff]   ;;  %v3950_v59 = vld [vmem:[%s5057_s16] ss:$16 sps:$4 sm:$0xff]   ;;  %v3958_v13 = vld [vmem:[%s5057_s16 + $0x24] ss:$16 sps:$4 sm:$0xff]   ;;  %p4039_p3 = por (%p1811_p11), %p4038_p2, %p4037_p1 }
 0x43e   : > { %p4040_p4 = pnand (%p1811_p11), %p4039_p3, %p4033_p0 }
 0x43f   : >> { %2294 = vmatpush1.bf16.msra.mxu0 %v3866_v60  ;;  %2335 = vmatpush1.bf16.msra.mxu1 %v3869_v61  ;;  %v3953_v60 = vld [vmem:[%s5057_s16 + $0x8] ss:$16 sps:$4 sm:$0xff]   ;;  %v3961_v61 = vld [vmem:[%s5057_s16 + $0x2c] ss:$16 sps:$4 sm:$0xff]  }
 0x440   : >> { %2295 = vmatprep.subr.bf16.mxu0 %v3874_v62  ;;  %2336 = vmatprep.subr.bf16.mxu1 %v3877_v63  ;;  %v3956_v62 = vld [vmem:[%s5057_s16 + $0x20] ss:$16 sps:$4 sm:$0xff]   ;;  %v3959_v63 = vld [vmem:[%s5057_s16 + $0x28] ss:$16 sps:$4 sm:$0xff]  }
 0x443   : >> { %2296 = vmatpush1.bf16.msra.mxu0 %v3872_v0  ;;  %2337 = vmatpush1.bf16.msra.mxu1 %v3875_v1  ;;  %v3964_v0 = vld [vmem:[%s5057_s16 + $0x44] ss:$16 sps:$4 sm:$0xff]   ;;  %v3962_v1 = vld [vmem:[%s5057_s16 + $0x40] ss:$16 sps:$4 sm:$0xff]  }
 0x444   : >> { %2297 = vmatprep.subr.bf16.mxu0 %v3880_v2  ;;  %2338 = vmatprep.subr.bf16.mxu1 %v3883_v3  ;;  %v3965_v2 = vld [vmem:[%s5057_s16 + $0x48] ss:$16 sps:$4 sm:$0xff]   ;;  %v3970_v3 = vld [vmem:[%s5057_s16 + $0x64] ss:$16 sps:$4 sm:$0xff]  }
 0x447   : >> { %2298 = vmatpush1.bf16.msra.mxu0 %v3878_v4  ;;  %2339 = vmatpush1.bf16.msra.mxu1 %v3881_v5  ;;  %v3973_v4 = vld [vmem:[%s5057_s16 + $0x6c] ss:$16 sps:$4 sm:$0xff]   ;;  %v3968_v5 = vld [vmem:[%s5057_s16 + $0x60] ss:$16 sps:$4 sm:$0xff]  }
 0x448   : >> { %2299 = vmatprep.subr.bf16.mxu0 %v3886_v6  ;;  %2340 = vmatprep.subr.bf16.mxu1 %v3889_v7  ;;  %v3971_v6 = vld [vmem:[%s5057_s16 + $0x68] ss:$16 sps:$4 sm:$0xff]   ;;  %v3976_v7 = vld [vmem:[%s5057_s16 + $0x84] ss:$16 sps:$4 sm:$0xff]  }
 0x44b   : >> { %2300 = vmatpush1.bf16.msra.mxu0 %v3884_v8  ;;  %2341 = vmatpush1.bf16.msra.mxu1 %v3887_v9  ;;  %v3974_v8 = vld [vmem:[%s5057_s16 + $0x80] ss:$16 sps:$4 sm:$0xff]   ;;  %v3979_v9 = vld [vmem:[%s5057_s16 + $0x8c] ss:$16 sps:$4 sm:$0xff]  }
 0x44c   : >> { %2301 = vmatprep.subr.bf16.mxu0 %v3892_v10  ;;  %2342 = vmatprep.subr.bf16.mxu1 %v3895_v11  ;;  %v3977_v10 = vld [vmem:[%s5057_s16 + $0x88] ss:$16 sps:$4 sm:$0xff]   ;;  %v3982_v11 = vld [vmem:[%s5057_s16 + $0xa4] ss:$16 sps:$4 sm:$0xff]  }
 0x44f   : >> { %2302 = vmatpush1.bf16.msra.mxu0 %v3890_v15  ;;  %2343 = vmatpush1.bf16.msra.mxu1 %v3893_v16  ;;  %v3985_v15 = vld [vmem:[%s5057_s16 + $0xac] ss:$16 sps:$4 sm:$0xff]   ;;  %v3980_v16 = vld [vmem:[%s5057_s16 + $0xa0] ss:$16 sps:$4 sm:$0xff]  }
 0x450   : >> { %2303 = vmatprep.subr.bf16.mxu0 %v3898_v17  ;;  %2344 = vmatprep.subr.bf16.mxu1 %v3901_v19  ;;  %v3983_v17 = vld [vmem:[%s5057_s16 + $0xa8] ss:$16 sps:$4 sm:$0xff]   ;;  %v3988_v19 = vld [vmem:[%s5057_s16 + $0xc4] ss:$16 sps:$4 sm:$0xff]  }
 0x453   : >> { %2304 = vmatpush1.bf16.msra.mxu0 %v3896_v20  ;;  %2345 = vmatpush1.bf16.msra.mxu1 %v3899_v21  ;;  %v3991_v20 = vld [vmem:[%s5057_s16 + $0xcc] ss:$16 sps:$4 sm:$0xff]   ;;  %v3986_v21 = vld [vmem:[%s5057_s16 + $0xc0] ss:$16 sps:$4 sm:$0xff]  }
 0x454   : >> { %2647 = vmatprep.subr.bf16.mxu0 %v3904_v25  ;;  %2688 = vmatprep.subr.bf16.mxu1 %v3907_v27  ;;  %v3992_v25 = vld [vmem:[%s5057_s16 + $0xe0] ss:$16 sps:$4 sm:$0xff]  }
 0x456   : >> { %2322 = vmatmul.mubr.bf16.vlgmr.msra.gmra.mrb[4].mxu0 %v1821_v23  ;;  %2363 = vmatmul.mubr.bf16.vlgmr.msra.gmra.mrb[4].mxu1 %v1821_v23  ;;  %v3994_v23 = vld [vmem:[%s5057_s16 + $0xe4] ss:$16 sps:$4 sm:$0xff]  }
 0x457   : >> { %2679 = vmatprep.mubr.bf16.mxu0 %v4136_v18  ;;  %2720 = vmatprep.mubr.bf16.mxu1 %v4136_v18 }
 0x458   : >> { %2648 = vmatpush1.bf16.msra.mxu0 %v3902_v24  ;;  %2689 = vmatpush1.bf16.msra.mxu1 %v3905_v26  ;;  %v3997_v24 = vld [vmem:[%s5057_s16 + $0xec] ss:$16 sps:$4 sm:$0xff]   ;;  %v3995_v26 = vld [vmem:[%s5057_s16 + $0xe8] ss:$16 sps:$4 sm:$0xff]  }
 0x459   : >> { %2649 = vmatprep.subr.bf16.mxu0 %v3910_v28  ;;  %2690 = vmatprep.subr.bf16.mxu1 %v3913_v29 }
 0x45c   : >> { %2650 = vmatpush1.bf16.msra.mxu0 %v3908_v30  ;;  %2691 = vmatpush1.bf16.msra.mxu1 %v3911_v31 }
 0x45d   : >> { %2651 = vmatprep.subr.bf16.mxu0 %v3916_v32  ;;  %2692 = vmatprep.subr.bf16.mxu1 %v3919_v33 }
 0x460   : >> { %2652 = vmatpush1.bf16.msra.mxu0 %v3914_v34  ;;  %2693 = vmatpush1.bf16.msra.mxu1 %v3917_v35  ;;  %v2373_v35 = vlaneseq }
 0x461   : >> { %2653 = vmatprep.subr.bf16.mxu0 %v3922_v36  ;;  %2694 = vmatprep.subr.bf16.mxu1 %v3925_v38  ;;  %v2371_v38 = vld [vmem:[%s5056_s15] sm:$0xf] }
 0x462   : >> { %v4947_v36 = vshrl.u32 %v2373_v35, 7 }
 0x464   : >> { %2654 = vmatpush1.bf16.msra.mxu0 %v3920_v37  ;;  %2695 = vmatpush1.bf16.msra.mxu1 %v3923_v39  ;;  %v2375_v37 = vsub.s32 0, %v4947_v36  ;;  %v2379_v39 = vsub.s32 1, %v4947_v36 }
 0x465   : >> { %2655 = vmatprep.subr.bf16.mxu0 %v3928_v40  ;;  %2696 = vmatprep.subr.bf16.mxu1 %v3931_v42 }
 0x466   : >> { %v2376_v40 = vrot.slane %v2371_v38, %v2375_v37 }
 0x468   : >> { %2656 = vmatpush1.bf16.msra.mxu0 %v3926_v41  ;;  %2697 = vmatpush1.bf16.msra.mxu1 %v3929_v43  ;;  %v2380_v43 = vrot.slane %v2371_v38, %v2379_v39 }
 0x469   : >> { %2657 = vmatprep.subr.bf16.mxu0 %v3934_v44  ;;  %2698 = vmatprep.subr.bf16.mxu1 %v3937_v46  ;;  %v2387_v44 = vsub.s32 3, %v4947_v36 }
 0x46c   : >> { %2658 = vmatpush1.bf16.msra.mxu0 %v3932_v45  ;;  %2699 = vmatpush1.bf16.msra.mxu1 %v3935_v47 }
 0x46d   : >> { %2659 = vmatprep.subr.bf16.mxu0 %v3940_v48  ;;  %2700 = vmatprep.subr.bf16.mxu1 %v3943_v50 }
 0x470   : >> { %2660 = vmatpush1.bf16.msra.mxu0 %v3938_v49  ;;  %2701 = vmatpush1.bf16.msra.mxu1 %v3941_v51 }
 0x471   : >> { %2661 = vmatprep.subr.bf16.mxu0 %v3946_v52  ;;  %2702 = vmatprep.subr.bf16.mxu1 %v3949_v54 }
 0x474   : >> { %2662 = vmatpush1.bf16.msra.mxu0 %v3944_v53  ;;  %2703 = vmatpush1.bf16.msra.mxu1 %v3947_v55 }
 0x475   : >> { %2889 = vmatprep.subr.bf16.mxu0 %v3952_v57  ;;  %2930 = vmatprep.subr.bf16.mxu1 %v3955_v58  ;;  %v2388_v57 = vrot.slane %v2371_v38, %v2387_v44 }
 0x477   : >> { %2680 = vmatmul.mubr.bf16.vlgmr.msra.gmra.mrb[8].mxu0 %v2454_v56  ;;  %2721 = vmatmul.mubr.bf16.vlgmr.msra.gmra.mrb[8].mxu1 %v2454_v56 }
 0x478   : >> { %2921 = vmatprep.mubr.bf16.mxu0 %v4136_v18  ;;  %2890 = vmatpush1.bf16.msra.mxu0 %v3950_v59 }
 0x479   : >> { %2931 = vmatpush1.bf16.msra.mxu1 %v3953_v60  ;;  %2962 = vmatprep.mubr.bf16.mxu1 %v4136_v18  ;;  %v3967_v18 = vld [vmem:[%s5057_s16 + $0x4c] ss:$16 sps:$4 sm:$0xff]  }
 0x47a   : >> { %2891 = vmatprep.subr.bf16.mxu0 %v3958_v13  ;;  %2932 = vmatprep.subr.bf16.mxu1 %v3961_v61 }
 0x47c   : >> { %2892 = vmatpush1.bf16.msra.mxu0 %v3956_v62  ;;  %v2383_v62 = vsub.s32 2, %v4947_v36 }
 0x47d   : >> { %2933 = vmatpush1.bf16.msra.mxu1 %v3959_v63  ;;  %2893 = vmatprep.subr.bf16.mxu0 %v3964_v0 }
 0x47e   : >> { %2934 = vmatprep.subr.bf16.mxu1 %v3967_v18  ;;  %v2384_v0 = vrot.slane %v2371_v38, %v2383_v62 }
 0x480   : >> { %2894 = vmatpush1.bf16.msra.mxu0 %v3962_v1 }
 0x481   : >> { %2935 = vmatpush1.bf16.msra.mxu1 %v3965_v2  ;;  %2895 = vmatprep.subr.bf16.mxu0 %v3970_v3 }
 0x482   : >> { %2936 = vmatprep.subr.bf16.mxu1 %v3973_v4 }
 0x484   : >> { %2896 = vmatpush1.bf16.msra.mxu0 %v3968_v5 }
 0x485   : >> { %2937 = vmatpush1.bf16.msra.mxu1 %v3971_v6  ;;  %2897 = vmatprep.subr.bf16.mxu0 %v3976_v7 }
 0x486   : >> { %2938 = vmatprep.subr.bf16.mxu1 %v3979_v9 }
 0x488   : >> { %2898 = vmatpush1.bf16.msra.mxu0 %v3974_v8 }
 0x489   : >> { %2939 = vmatpush1.bf16.msra.mxu1 %v3977_v10  ;;  %2899 = vmatprep.subr.bf16.mxu0 %v3982_v11 }
 0x48a   : >> { %2940 = vmatprep.subr.bf16.mxu1 %v3985_v15 }
 0x48c   : >> { %2900 = vmatpush1.bf16.msra.mxu0 %v3980_v16 }
 0x48d   : >> { %2941 = vmatpush1.bf16.msra.mxu1 %v3983_v17  ;;  %2901 = vmatprep.subr.bf16.mxu0 %v3988_v19 }
 0x48e   : >> { %2942 = vmatprep.subr.bf16.mxu1 %v3991_v20 }
 0x490   : >> { %2902 = vmatpush1.bf16.msra.mxu0 %v3986_v21 }
 0x491   : >> { %2943 = vmatpush1.bf16.msra.mxu1 %v3989_v22  ;;  %2903 = vmatprep.subr.bf16.mxu0 %v3994_v23 }
 0x492   : >> { %2944 = vmatprep.subr.bf16.mxu1 %v3997_v24 }
 0x494   : >> { %2904 = vmatpush1.bf16.msra.mxu0 %v3992_v25 }
 0x495   : >> { %2945 = vmatpush1.bf16.msra.mxu1 %v3995_v26 }
 0x509   : >> { %v2081_v27 = vpop.f32.mrb[0].mxu0  ;;  %v2122_v28 = vpop.f32.mrb[0].mxu1 }
 0x50a   : >> { %v2083_v29 = vpop.f32.mrb[1].mxu0  ;;  %v2124_v30 = vpop.f32.mrb[1].mxu1 }
 0x50b   : >> { %v2085_v31 = vpop.f32.mrb[2].mxu0  ;;  %v2126_v32 = vpop.f32.mrb[2].mxu1 }
 0x50c   : >> { %v2086_v33 = vpop.f32.mrb[3].mxu0  ;;  %v2127_v34 = vpop.f32.mrb[3].mxu1 }
 0x529   : >> { %v2323_v41 = vpop.f32.mrb[4].mxu0  ;;  %v2364_v42 = vpop.f32.mrb[4].mxu1 }
 0x52a   : >> { %v2324_v45 = vadd.f32 %v2323_v41, %v2081_v27  ;;  %v2365_v46 = vadd.f32 %v2364_v42, %v2122_v28  ;;  %v2325_v47 = vpop.f32.mrb[5].mxu0  ;;  %v2366_v48 = vpop.f32.mrb[5].mxu1  ;;  %v2971_v28 = vld [vmem:[%s5059_s18] sm:$0xf] }
 0x52b   : >> { %v2326_v49 = vadd.f32 %v2325_v47, %v2083_v29  ;;  %v2367_v50 = vadd.f32 %v2366_v48, %v2124_v30  ;;  %v2327_v51 = vpop.f32.mrb[6].mxu0  ;;  %v2368_v52 = vpop.f32.mrb[6].mxu1  ;;  %v2976_v29 = vrot.slane %v2971_v28, %v2375_v37  ;;  %v2980_v32 = vrot.slane %v2971_v28, %v2379_v39 }
 0x52c   : >> { %v2393_v53 = vadd.f32 %v2376_v40, %v2324_v45  ;;  %v2328_v54 = vpop.f32.mrb[7].mxu0  ;;  %v2369_v55 = vpop.f32.mrb[7].mxu1  ;;  %v2395_v1 = vadd.f32 %v2384_v0, %v2365_v46  ;;  %v2988_v37 = vrot.slane %v2971_v28, %v2387_v44 }
 0x52d   : >> { %v2394_v56 = vadd.f32 %v2380_v43, %v2326_v49  ;;  %v2396_v61 = vadd.f32 %v2388_v57, %v2367_v50  ;;  %v2984_v54 = vrot.slane %v2971_v28, %v2383_v62 }
 0x52e   : >> { %v2397_v58 = vsub.f32 0.0, %v2393_v53 }
 0x52f   : >> { %v2403_v59 = vsub.f32 0.0, %v2394_v56  ;;  %v2410_v63 = vsub.f32 0.0, %v2396_v61 }
 0x530   : >> { %v2398_v60 = vmul.f32 1.442695, %v2397_v58 }
 0x531   : >> { %v2404_v13 = vmul.f32 1.442695, %v2403_v59  ;;  %v2411_v18 = vmul.f32 1.442695, %v2410_v63 }
 0x532   : >> { %3998 = vpow2.f32 %v2398_v60 }
 0x533   : >> { %4000 = vpow2.f32 %v2404_v13 }
 0x534   : >> { %4002 = vpow2.f32 %v2411_v18 }
 0x535   : >> { %4004 = vtanh.f32 %v2395_v1 }
 0x53c   : >> { %v3999_v2 = vpop.eup %3998 }
 0x53d   : >> { %v4001_v3 = vpop.eup %4000  ;;  %v2400_v4 = vadd.f32 1.0, %v3999_v2 }
 0x53e   : >> { %v2406_v5 = vadd.f32 1.0, %v4001_v3  ;;  %v4003_v6 = vpop.eup %4002 }
 0x53f   : >> { %4006 = vrcp.f32 %v2400_v4  ;;  %v4005_v7 = vpop.eup %4004  ;;  %v2413_v11 = vadd.f32 1.0, %v4003_v6 }
 0x540   : >> { %4008 = vrcp.f32 %v2406_v5 }
 0x541   : >> { %4010 = vrcp.f32 %v2413_v11 }
 0x549   : >> { %v4007_v8 = vpop.eup %4006 }
 0x54a   : >> { %v4009_v9 = vpop.eup %4008  ;;  %v2417_v10 = vmul.f32 %v4007_v8, %v4005_v7  ;;  %v2681_v20 = vpop.f32.mrb[8].mxu0 }
 0x54b   : >> { %v2416_v15 = vmul.f32 %v4124_v14, %v4009_v9  ;;  %v4011_v16 = vpop.eup %4010  ;;  %v2683_v21 = vpop.f32.mrb[9].mxu0 }
 0x54c   : >> { %v2685_v22 = vpop.f32.mrb[10].mxu0  ;;  %v2722_v24 = vpop.f32.mrb[8].mxu1 }
 0x54d   : >> { %v4965_v14 = vadd.f32 %v2417_v10, %v2416_v15   ;;  %v2686_v23 = vpop.f32.mrb[11].mxu0  ;;  %v2724_v25 = vpop.f32.mrb[9].mxu1 }
 0x54e   : >> { %v2726_v26 = vpop.f32.mrb[10].mxu1 }
 0x54f   : >> { %4012 = vtanh.f32 %v4965_v14  ;;  %v2727_v27 = vpop.f32.mrb[11].mxu1 }
 0x559   : >> { %v4013_v17 = vpop.eup %4012 }
 0x55a   : >> { %v4968_v15 = vmul.f32 %v4013_v17, %v4011_v16  }
 0x55c   : >> { %v2421_v19 = vpack.c.bf16 %v4968_v15, %v4968_v15 }
 0x55e   : >> { %2922 = vmatmul.mubr.bf16.vlgmr.msra.gmra.mrb[12].mxu0 %v2421_v19  ;;  %2963 = vmatmul.mubr.bf16.vlgmr.msra.gmra.mrb[12].mxu1 %v2421_v19 }
 0x631   : >> { %v2923_v30 = vpop.f32.mrb[12].mxu0  ;;  %v2964_v31 = vpop.f32.mrb[12].mxu1 }
 0x632   : >> { %v2924_v33 = vadd.f32 %v2923_v30, %v2681_v20  ;;  %v2965_v34 = vadd.f32 %v2964_v31, %v2722_v24  ;;  %v2925_v35 = vpop.f32.mrb[13].mxu0  ;;  %v2966_v38 = vpop.f32.mrb[13].mxu1 }
 0x633   : >> { %v2926_v40 = vadd.f32 %v2925_v35, %v2683_v21  ;;  %v2967_v41 = vadd.f32 %v2966_v38, %v2724_v25  ;;  %v2927_v42 = vpop.f32.mrb[14].mxu0  ;;  %v2968_v43 = vpop.f32.mrb[14].mxu1 }
 0x634   : >> { %v2993_v45 = vadd.f32 %v2976_v29, %v2924_v33  ;;  %v2928_v46 = vpop.f32.mrb[15].mxu0  ;;  %v2969_v47 = vpop.f32.mrb[15].mxu1  ;;  %v2995_v56 = vadd.f32 %v2984_v54, %v2965_v34 }
 0x635   : >> { %v2994_v48 = vadd.f32 %v2980_v32, %v2926_v40  ;;  %v2996_v39 = vadd.f32 %v2988_v37, %v2967_v41 }
 0x636   : >> { %v2997_v49 = vsub.f32 0.0, %v2993_v45 }
 0x637   : >> { %v3003_v50 = vsub.f32 0.0, %v2994_v48  ;;  %v3010_v53 = vsub.f32 0.0, %v2996_v39 }
 0x638   : >> { %v2998_v51 = vmul.f32 1.442695, %v2997_v49 }
 0x639   : >> { %v3004_v52 = vmul.f32 1.442695, %v3003_v50  ;;  %v3011_v55 = vmul.f32 1.442695, %v3010_v53 }
 0x63a   : >> { %4014 = vpow2.f32 %v2998_v51 }
 0x63b   : >> { %4016 = vpow2.f32 %v3004_v52 }
 0x63c   : >> { %4018 = vpow2.f32 %v3011_v55 }
 0x63d   : >> { %4020 = vtanh.f32 %v2995_v56 }
 0x644   : >> { %v4015_v57 = vpop.eup %4014 }
 0x645   : >> { %v4017_v58 = vpop.eup %4016  ;;  %v3000_v59 = vadd.f32 1.0, %v4015_v57 }
 0x646   : >> { %v3006_v60 = vadd.f32 1.0, %v4017_v58  ;;  %v4019_v44 = vpop.eup %4018 }
 0x647   : >> { %4022 = vrcp.f32 %v3000_v59  ;;  %v4021_v13 = vpop.eup %4020  ;;  %v3013_v18 = vadd.f32 1.0, %v4019_v44 }
 0x648   : >> { %4024 = vrcp.f32 %v3006_v60 }
 0x649   : >> { %4026 = vrcp.f32 %v3013_v18 }
 0x651   : >> { %v4023_v61 = vpop.eup %4022 }
 0x652   : >> { %v4025_v63 = vpop.eup %4024  ;;  %v3017_v0 = vmul.f32 %v4023_v61, %v4021_v13 }
 0x653   : >> { %v3016_v1 = vmul.f32 %v4116_v12, %v4025_v63  ;;  %v4027_v36 = vpop.eup %4026 }
 0x655   : >> { %v3018_v12 = vadd.f32 %v3017_v0, %v3016_v1  }
 0x657   : >> { %4028 = vtanh.f32 %v3018_v12 }
 0x65e   : > { %1813 = sbr.rel (!%p1811_p11) target bundleno = 1044 (0x414), region = 147 }
 0x661   : >> { %v4029_v62 = vpop.eup %4028 }
 0x662   : >> { %v3020_v2 = vmul.f32 %v4029_v62, %v4027_v36  }
 0x664   : >> { %v5089_v13 = vmov %v3020_v2  ;;  %3021 = vst [vmem:[%s4523_s24] sm:$0x1] (%p1811_p11), %v3020_v2 }
 0x665   : > { %4043 = shalt.err (!%p4040_p4)
}
 0x666   : > { %s4044_s1 = scalar_lea.hbm %s5002_s5, 16  ;;  %s4048_s27 = scalar_lea.hbm %s5060_s19, 32 }
 0x667   : > { %p4045_p7 = scmp.ne.s32.totalorder %s5002_s5, %s4044_s1  ;;  %p4049_p10 = scmp.lt.u32.totalorder %s5002_s5, %s5060_s19 }
 0x668   : > { %p4050_p11 = scmp.lt.u32.totalorder %s4048_s27, %s4044_s1  ;;  %p4052_p13 = scmp.lt.u32.totalorder %s4044_s1, %s5002_s5 }
 0x669   : > { %p4046_p8 = pnand %p4045_p7, %p4276_p5 }
 0x66a   : > { %p4051_p12 = por %p4050_p11, %p4049_p10 }
 0x66b   : > { %p4047_p9 = pneg %p4046_p8 }
 0x66c   : > { %p4053_p0 = por %p4052_p13, %p4051_p12 }
 0x66e   : > { %p4054_p1 = pnand %p4053_p0, %p4047_p9 }
 0x670   : > { %4057 = shalt.err (!%p4054_p1)
}
 0x671   : > { %3662 = dma.vmem_to_hbm [thread:$0]  (%p4276_p5), %s3036_s6, 16, %s5002_s5, %s3023_s29  }
 0x672 PF: > { %p3668_p2 = scmp.ge.s32.totalorder %s4112_s21, 2  ;;  %s3047_s4 = sand.u32 1, %s4100_s0  }
 0x673   : > { %s3048_s20 = scalar_lea.sflag [#allocation8], %s3047_s4 }
 0x674   : > { %p3665_p3 = pnand %p3668_p2, %p4280_p6 }
 0x676   : > { %4095 = dma.done.wait (!%p3665_p3), %s3048_s20, 16  }
 0x677   : > { %4097 = vsyncadd (!%p3665_p3), %s3048_s20, 4294967280  ;;  %s5092_s21 = sld [smem:[#allocation11_spill]]  ;;  %s5093_s7 = sld [smem:[#allocation10_spill]] }
 0x678   : > { %s5094_s20 = sld [smem:[#allocation12_spill]]  ;;  %s5095_s0 = smov %s4104_s30 }
 0x67d   : > { %p29_p4 = scmp.ge.s32.totalorder %s5092_s21, 4   ;;  %s5096_s30 = smov %s5093_s7 }
 0x67f   :  { %31 = sbr.rel (!%p29_p4) target bundleno = 12 (0xc), region = 158 }
 0x686   :  { %3052 = vsyncpa [#allocation8], 1 }
 0x687   :  { %3054 = vsyncpa [#allocation8 + $0x1], 1 }

</bundles_post_ra>
